<compile_context>
chip_gen: v5e
topology: v5e:2x2
jax: 0.10.0
libtpu: 0.0.40
codegen_flags: <defaults>
</compile_context>

<pallas_src>
import functools

import jax
import jax.numpy as jnp
from jax import lax
from jax.experimental import pallas as pl
from jax.experimental.pallas import tpu as pltpu


# ------------------------- Pallas kernels (hot path) -------------------------

def _fused_gemm_kernel(x_ref, w_ref, shift_ref, o_ref, *, activation, neg_slope):
    # (TM, K)bf16 @ (K, Cout)bf16 on the MXU, f32 accumulation.
    acc = jnp.dot(x_ref[...], w_ref[...], preferred_element_type=jnp.float32)
    acc = acc + shift_ref[...]            # folded BatchNorm shift (scale is in w)
    if activation == "leaky_relu":
        acc = jnp.where(acc >= 0.0, acc, neg_slope * acc)
    elif activation == "sigmoid":
        acc = 1.0 / (1.0 + jnp.exp(-acc))
    o_ref[...] = acc.astype(o_ref.dtype)


def _tail_kernel(x_ref, w4_ref, shift4_ref, w5_ref, sel_ref, o_ref, *, neg_slope):
    # layer 4: (M4, K4)bf16 @ (K4, C4)bf16 + shift, LeakyReLU (f32 throughout).
    acc = jnp.dot(x_ref[...], w4_ref[...], preferred_element_type=jnp.float32)
    acc = acc + shift4_ref[...]
    act = jnp.where(acc >= 0.0, acc, neg_slope * acc)           # (M4, C4) f32
    # layer 5: 4x4 valid conv over the whole map == weighted sum of all
    # (spatial, channel) positions of each sample.
    prod = act * w5_ref[...]                                    # (M4, C4)
    grouped = jnp.dot(sel_ref[...], prod,
                      preferred_element_type=jnp.float32)       # (N, C4)
    logits = jnp.sum(grouped, axis=1, keepdims=True)            # (N, 1)
    o_ref[...] = 1.0 / (1.0 + jnp.exp(-logits))


# ------------------------------ glue (JAX) -----------------------------------

def _round_up(x, m):
    return (x + m - 1) // m * m


def _im2col(x_nhwc, kh, kw, stride, pad):
    n, h, w, c = x_nhwc.shape
    xp = jnp.pad(x_nhwc, ((0, 0), (pad, pad), (pad, pad), (0, 0)))
    ho = (h + 2 * pad - kh) // stride + 1
    wo = (w + 2 * pad - kw) // stride + 1
    cols = []
    for i in range(kh):
        for j in range(kw):
            cols.append(xp[:, i:i + stride * ho:stride,
                           j:j + stride * wo:stride, :])
    patches = jnp.stack(cols, axis=3)               # (N, Ho, Wo, kh*kw, C)
    return patches.reshape(n * ho * wo, kh * kw * c), ho, wo


def _fold_weight(w_oihw, scale):
    # PyTorch (O, I, kh, kw) -> (kh*kw*I, O); BN scale folded into the columns.
    o, ci, kh, kw = w_oihw.shape
    w2 = jnp.transpose(w_oihw, (2, 3, 1, 0)).reshape(kh * kw * ci, o)
    if scale is not None:
        w2 = w2 * scale.reshape(1, o)
    return w2.astype(jnp.bfloat16)


def _pick_tm(m):
    if m >= 1024:
        return 512
    if m >= 256:
        return _round_up((m + 1) // 2, 8)   # >= 2 parallel steps (v7x megacore)
    return _round_up(m, 8)


def fused_conv_bn_act(x_nhwc, w_oihw, scale, shift, *, stride, pad,
                      activation, neg_slope=0.2, out_dtype=jnp.bfloat16):
    n = x_nhwc.shape[0]
    o, ci, kh, kw = w_oihw.shape
    patches, ho, wo = _im2col(x_nhwc.astype(jnp.bfloat16), kh, kw, stride, pad)
    wmat = _fold_weight(w_oihw, scale)                 # (K, Cout) bf16
    sh = shift.reshape(1, o).astype(jnp.float32)

    m, k = patches.shape
    tm = _pick_tm(m)
    mp = _round_up(m, tm)
    if mp != m:
        patches = jnp.pad(patches, ((0, mp - m), (0, 0)))

    out = pl.pallas_call(
        functools.partial(_fused_gemm_kernel, activation=activation,
                          neg_slope=neg_slope),
        out_shape=jax.ShapeDtypeStruct((mp, o), out_dtype),
        grid=(mp // tm,),
        in_specs=[
            pl.BlockSpec((tm, k), lambda gi: (gi, 0)),
            pl.BlockSpec((k, o), lambda gi: (0, 0)),
            pl.BlockSpec((1, o), lambda gi: (0, 0)),
        ],
        out_specs=pl.BlockSpec((tm, o), lambda gi: (gi, 0)),
        compiler_params=pltpu.CompilerParams(
            dimension_semantics=("parallel",)),
    )(patches, wmat, sh)

    if mp != m:
        out = out[:m]
    return out.reshape(n, ho, wo, o)


def fused_tail(x_nhwc, w4_oihw, scale4, shift4, w5_oihw, *, neg_slope=0.2):
    """Conv(c3->c4, 4,2,1)+BN+LeakyReLU then Conv(c4->1, 4,1,0)+Sigmoid, fused
    into a single Pallas call (valid when the final conv output is 1x1)."""
    n = x_nhwc.shape[0]
    c4, c3, kh, kw = w4_oihw.shape
    patches, ho, wo = _im2col(x_nhwc.astype(jnp.bfloat16), kh, kw, 2, 1)
    assert (w5_oihw.shape[2], w5_oihw.shape[3]) == (ho, wo), \
        "final conv must cover the whole feature map"

    w4 = _fold_weight(w4_oihw, scale4)                         # (kh*kw*c3, c4)
    sh4 = shift4.reshape(1, c4).astype(jnp.float32)

    m4 = n * ho * wo
    m4p = _round_up(m4, 8)
    k4 = kh * kw * c3

    # layer-5 weight in "flattened layer-4 output" order, tiled per sample.
    w5r = jnp.transpose(w5_oihw, (2, 3, 1, 0)).reshape(ho * wo, c4)
    w5t = jnp.tile(w5r, (n, 1)).astype(jnp.float32)            # (m4, c4)
    sel = (jnp.arange(m4) // (ho * wo) ==
           jnp.arange(n)[:, None]).astype(jnp.float32)         # (n, m4)
    if m4p != m4:
        patches = jnp.pad(patches, ((0, m4p - m4), (0, 0)))
        w5t = jnp.pad(w5t, ((0, m4p - m4), (0, 0)))
        sel = jnp.pad(sel, ((0, 0), (0, m4p - m4)))

    out = pl.pallas_call(
        functools.partial(_tail_kernel, neg_slope=neg_slope),
        out_shape=jax.ShapeDtypeStruct((n, 1), jnp.float32),
        grid=(1,),
        in_specs=[
            pl.BlockSpec((m4p, k4), lambda i: (0, 0)),
            pl.BlockSpec((k4, c4), lambda i: (0, 0)),
            pl.BlockSpec((1, c4), lambda i: (0, 0)),
            pl.BlockSpec((m4p, c4), lambda i: (0, 0)),
            pl.BlockSpec((n, m4p), lambda i: (0, 0)),
        ],
        out_specs=pl.BlockSpec((n, 1), lambda i: (0, 0)),
    )(patches, w4, sh4, w5t, sel)

    return out.reshape(n, 1, 1, 1)


# --------------------------- Discriminator model -----------------------------

def init_params(key, img_size, n_channels):
    """Deterministic DCGAN-style init (conv ~ N(0, 0.02), BN gamma ~ N(1, 0.02))."""
    ndf = img_size
    layer_io = [(n_channels, ndf), (ndf, 2 * ndf), (2 * ndf, 4 * ndf),
                (4 * ndf, 8 * ndf), (8 * ndf, 1)]
    keys = iter(jax.random.split(key, 17))
    p = {}
    for li, (cin, cout) in enumerate(layer_io, start=1):
        p[f"w{li}"] = 0.02 * jax.random.normal(next(keys), (cout, cin, 4, 4),
                                               jnp.float32)
    for li, c in zip((2, 3, 4), (2 * ndf, 4 * ndf, 8 * ndf)):
        p[f"bn{li}_gamma"] = 1.0 + 0.02 * jax.random.normal(next(keys), (c,))
        p[f"bn{li}_beta"] = 0.02 * jax.random.normal(next(keys), (c,))
        p[f"bn{li}_mean"] = 0.1 * jax.random.normal(next(keys), (c,))
        p[f"bn{li}_var"] = 1.0 + 0.1 * jax.random.uniform(next(keys), (c,))
    return p


def discriminator_forward(x_nchw, p, eps=1e-5):
    # NCHW -> NHWC, single cast to bf16 (all downstream GEMMs are bf16 anyway).
    x = jnp.transpose(x_nchw, (0, 2, 3, 1)).astype(jnp.bfloat16)

    def bn_fold(li):
        scale = p[f"bn{li}_gamma"] / jnp.sqrt(p[f"bn{li}_var"] + eps)
        shift = p[f"bn{li}_beta"] - p[f"bn{li}_mean"] * scale
        return scale, shift

    # Conv(n_channels -> ndf) + LeakyReLU(0.2)   (no BN on the first block)
    c1 = p["w1"].shape[0]
    x = fused_conv_bn_act(x, p["w1"], None, jnp.zeros((c1,)),
                          stride=2, pad=1, activation="leaky_relu")

    # Conv + BN + LeakyReLU blocks 2 and 3
    for li in (2, 3):
        scale, shift = bn_fold(li)
        x = fused_conv_bn_act(x, p[f"w{li}"], scale, shift,
                              stride=2, pad=1, activation="leaky_relu")

    # Blocks 4 + 5 fused: Conv+BN+LReLU then 4x4 valid Conv + Sigmoid (1x1 out)
    scale4, shift4 = bn_fold(4)
    x = fused_tail(x, p["w4"], scale4, shift4, p["w5"])
    return jnp.transpose(x, (0, 3, 1, 2))                          # NHWC -> NCHW


# --------------------------- pure-JAX reference -------------------------------

def reference_forward(x, p, eps=1e-5):
    def conv(y, w, stride, pad):
        return lax.conv_general_dilated(
            y, w, (stride, stride), [(pad, pad), (pad, pad)],
            dimension_numbers=("NCHW", "OIHW", "NCHW"))

    def lrelu(y):
        return jnp.where(y >= 0, y, 0.2 * y)

    y = lrelu(conv(x, p["w1"], 2, 1))
    for li in (2, 3, 4):
        y = conv(y, p[f"w{li}"], 2, 1)
        g = p[f"bn{li}_gamma"][None, :, None, None]
        b = p[f"bn{li}_beta"][None, :, None, None]
        rm = p[f"bn{li}_mean"][None, :, None, None]
        rv = p[f"bn{li}_var"][None, :, None, None]
        y = lrelu((y - rm) / jnp.sqrt(rv + eps) * g + b)
    y = conv(y, p["w5"], 1, 0)
    return jax.nn.sigmoid(y)


# ----------------------------------- main -------------------------------------

if __name__ == "__main__":
    IMG_SIZE = 8        # base feature width (the module's `img_size` argument)
    N_CHANNELS = 3
    BATCH = 2
    SPATIAL = 64        # architecture requires 64x64 input (4 stride-2 convs
                        # followed by a 4x4 valid conv -> 1x1 output)

    key = jax.random.PRNGKey(0)
    kparams, kx = jax.random.split(key)
    params = init_params(kparams, IMG_SIZE, N_CHANNELS)
    x = jax.random.normal(kx, (BATCH, N_CHANNELS, SPATIAL, SPATIAL), jnp.float32)

    fwd = jax.jit(discriminator_forward)
    ref_fwd = jax.jit(reference_forward)

    out = jax.block_until_ready(fwd(x, params))
    ref = jax.block_until_ready(ref_fwd(x, params))

    assert out.shape == (BATCH, 1, 1, 1), out.shape
    # bf16 MXU operands with f32 accumulation across 5 layers -> loosen the
    # f32-reference tolerance (sigmoid outputs are in [0, 1]).
    assert float(jnp.max(jnp.abs(out - ref))) < 2e-2, "mismatch vs reference"
    print("KERNEL_OK")
</pallas_src>

<mosaic_0001>
module attributes {stable_mosaic.version = 11 : i64} {
  func.func @_fused_gemm_kernel(%arg0: i32, %arg1: memref<512x48xbf16, #tpu.memory_space<vmem>>, %arg2: memref<48x8xbf16, #tpu.memory_space<vmem>>, %arg3: memref<1x8xf32, #tpu.memory_space<vmem>>, %arg4: memref<512x8xbf16, #tpu.memory_space<vmem>>) attributes {dimension_semantics = [#tpu.dimension_semantics<parallel>], iteration_bounds = array<i64: 4>, scalar_prefetch = 0 : i64, scratch_operands = 0 : i64, tpu.core_type = #tpu.core_type<tc>, window_params = [{transform_indices = @transform_0, window_bounds = array<i64: 512, 48>}, {pipeline_mode = #tpu.pipeline_mode<synchronous>, transform_indices = @transform_1, window_bounds = array<i64: 48, 8>}, {pipeline_mode = #tpu.pipeline_mode<synchronous>, transform_indices = @transform_2, window_bounds = array<i64: 1, 8>}, {transform_indices = @transform_3, window_bounds = array<i64: 512, 8>}]} {
    %c0 = arith.constant 0 : index
    %c0_0 = arith.constant 0 : index
    %0 = vector.load %arg1[%c0, %c0_0] : memref<512x48xbf16, #tpu.memory_space<vmem>>, vector<512x48xbf16>
    %c0_1 = arith.constant 0 : index
    %c0_2 = arith.constant 0 : index
    %1 = vector.load %arg2[%c0_1, %c0_2] : memref<48x8xbf16, #tpu.memory_space<vmem>>, vector<48x8xbf16>
    %cst = arith.constant dense<0.000000e+00> : vector<512x8xf32>
    %2 = tpu.matmul %0, %1, %cst {dimension_numbers = #tpu.dot_dimension_numbers<[1], [0], [0], [1], [0, 0, 1, 1], [], []>} : vector<512x48xbf16>, vector<48x8xbf16>, vector<512x8xf32> -> vector<512x8xf32>
    %c0_3 = arith.constant 0 : index
    %c0_4 = arith.constant 0 : index
    %3 = vector.load %arg3[%c0_3, %c0_4] : memref<1x8xf32, #tpu.memory_space<vmem>>, vector<1x8xf32>
    %4 = vector.broadcast %3 : vector<1x8xf32> to vector<512x8xf32>
    %5 = arith.addf %2, %4 : vector<512x8xf32>
    %cst_5 = arith.constant 0.000000e+00 : f32
    %6 = vector.broadcast %cst_5 : f32 to vector<512x8xf32>
    %7 = arith.cmpf oge, %5, %6 : vector<512x8xf32>
    %cst_6 = arith.constant 2.000000e-01 : f32
    %8 = vector.broadcast %cst_6 : f32 to vector<512x8xf32>
    %9 = arith.mulf %8, %5 : vector<512x8xf32>
    %10 = arith.select %7, %5, %9 : vector<512x8xi1>, vector<512x8xf32>
    %11 = arith.truncf %10 : vector<512x8xf32> to vector<512x8xbf16>
    %c0_7 = arith.constant 0 : index
    %c0_8 = arith.constant 0 : index
    %12 = vector.load %arg4[%c0_7, %c0_8] : memref<512x8xbf16, #tpu.memory_space<vmem>>, vector<512x8xbf16>
    tpu.vector_store %arg4[%c0_7, %c0_8], %11 {strides = array<i32>} : memref<512x8xbf16, #tpu.memory_space<vmem>>, vector<512x8xbf16>,
    return
  }
  func.func @transform_0(%arg0: i32) -> (i32, i32) {
    %c0_i32 = arith.constant 0 : i32
    %c0_i32_0 = arith.constant 0 : i32
    return %arg0, %c0_i32 : i32, i32
  }
  func.func @transform_1(%arg0: i32) -> (i32, i32) {
    %c0_i32 = arith.constant 0 : i32
    %c0_i32_0 = arith.constant 0 : i32
    %c0_i32_1 = arith.constant 0 : i32
    return %c0_i32, %c0_i32_0 : i32, i32
  }
  func.func @transform_2(%arg0: i32) -> (i32, i32) {
    %c0_i32 = arith.constant 0 : i32
    %c0_i32_0 = arith.constant 0 : i32
    %c0_i32_1 = arith.constant 0 : i32
    return %c0_i32, %c0_i32_0 : i32, i32
  }
  func.func @transform_3(%arg0: i32) -> (i32, i32) {
    %c0_i32 = arith.constant 0 : i32
    %c0_i32_0 = arith.constant 0 : i32
    return %arg0, %c0_i32 : i32, i32
  }
}

module attributes {stable_mosaic.version = 11 : i64} {
  func.func @_fused_gemm_kernel(%arg0: i32, %arg1: memref<256x128xbf16, #tpu.memory_space<vmem>>, %arg2: memref<128x16xbf16, #tpu.memory_space<vmem>>, %arg3: memref<1x16xf32, #tpu.memory_space<vmem>>, %arg4: memref<256x16xbf16, #tpu.memory_space<vmem>>) attributes {dimension_semantics = [#tpu.dimension_semantics<parallel>], iteration_bounds = array<i64: 2>, scalar_prefetch = 0 : i64, scratch_operands = 0 : i64, tpu.core_type = #tpu.core_type<tc>, window_params = [{transform_indices = @transform_0, window_bounds = array<i64: 256, 128>}, {pipeline_mode = #tpu.pipeline_mode<synchronous>, transform_indices = @transform_1, window_bounds = array<i64: 128, 16>}, {pipeline_mode = #tpu.pipeline_mode<synchronous>, transform_indices = @transform_2, window_bounds = array<i64: 1, 16>}, {transform_indices = @transform_3, window_bounds = array<i64: 256, 16>}]} {
    %c0 = arith.constant 0 : index
    %c0_0 = arith.constant 0 : index
    %0 = vector.load %arg1[%c0, %c0_0] : memref<256x128xbf16, #tpu.memory_space<vmem>>, vector<256x128xbf16>
    %c0_1 = arith.constant 0 : index
    %c0_2 = arith.constant 0 : index
    %1 = vector.load %arg2[%c0_1, %c0_2] : memref<128x16xbf16, #tpu.memory_space<vmem>>, vector<128x16xbf16>
    %cst = arith.constant dense<0.000000e+00> : vector<256x16xf32>
    %2 = tpu.matmul %0, %1, %cst {dimension_numbers = #tpu.dot_dimension_numbers<[1], [0], [0], [1], [0, 0, 1, 1], [], []>} : vector<256x128xbf16>, vector<128x16xbf16>, vector<256x16xf32> -> vector<256x16xf32>
    %c0_3 = arith.constant 0 : index
    %c0_4 = arith.constant 0 : index
    %3 = vector.load %arg3[%c0_3, %c0_4] : memref<1x16xf32, #tpu.memory_space<vmem>>, vector<1x16xf32>
    %4 = vector.broadcast %3 : vector<1x16xf32> to vector<256x16xf32>
    %5 = arith.addf %2, %4 : vector<256x16xf32>
    %cst_5 = arith.constant 0.000000e+00 : f32
    %6 = vector.broadcast %cst_5 : f32 to vector<256x16xf32>
    %7 = arith.cmpf oge, %5, %6 : vector<256x16xf32>
    %cst_6 = arith.constant 2.000000e-01 : f32
    %8 = vector.broadcast %cst_6 : f32 to vector<256x16xf32>
    %9 = arith.mulf %8, %5 : vector<256x16xf32>
    %10 = arith.select %7, %5, %9 : vector<256x16xi1>, vector<256x16xf32>
    %11 = arith.truncf %10 : vector<256x16xf32> to vector<256x16xbf16>
    %c0_7 = arith.constant 0 : index
    %c0_8 = arith.constant 0 : index
    %12 = vector.load %arg4[%c0_7, %c0_8] : memref<256x16xbf16, #tpu.memory_space<vmem>>, vector<256x16xbf16>
    tpu.vector_store %arg4[%c0_7, %c0_8], %11 {strides = array<i32>} : memref<256x16xbf16, #tpu.memory_space<vmem>>, vector<256x16xbf16>,
    return
  }
  func.func @transform_0(%arg0: i32) -> (i32, i32) {
    %c0_i32 = arith.constant 0 : i32
    %c0_i32_0 = arith.constant 0 : i32
    return %arg0, %c0_i32 : i32, i32
  }
  func.func @transform_1(%arg0: i32) -> (i32, i32) {
    %c0_i32 = arith.constant 0 : i32
    %c0_i32_0 = arith.constant 0 : i32
    %c0_i32_1 = arith.constant 0 : i32
    return %c0_i32, %c0_i32_0 : i32, i32
  }
  func.func @transform_2(%arg0: i32) -> (i32, i32) {
    %c0_i32 = arith.constant 0 : i32
    %c0_i32_0 = arith.constant 0 : i32
    %c0_i32_1 = arith.constant 0 : i32
    return %c0_i32, %c0_i32_0 : i32, i32
  }
  func.func @transform_3(%arg0: i32) -> (i32, i32) {
    %c0_i32 = arith.constant 0 : i32
    %c0_i32_0 = arith.constant 0 : i32
    return %arg0, %c0_i32 : i32, i32
  }
}

module attributes {stable_mosaic.version = 11 : i64} {
  func.func @_fused_gemm_kernel(%arg0: i32, %arg1: memref<128x256xbf16, #tpu.memory_space<vmem>>, %arg2: memref<256x32xbf16, #tpu.memory_space<vmem>>, %arg3: memref<1x32xf32, #tpu.memory_space<vmem>>, %arg4: memref<128x32xbf16, #tpu.memory_space<vmem>>) attributes {dimension_semantics = [#tpu.dimension_semantics<parallel>], iteration_bounds = array<i64: 1>, scalar_prefetch = 0 : i64, scratch_operands = 0 : i64, tpu.core_type = #tpu.core_type<tc>, window_params = [{transform_indices = @transform_0, window_bounds = array<i64: 128, 256>}, {pipeline_mode = #tpu.pipeline_mode<synchronous>, transform_indices = @transform_1, window_bounds = array<i64: 256, 32>}, {pipeline_mode = #tpu.pipeline_mode<synchronous>, transform_indices = @transform_2, window_bounds = array<i64: 1, 32>}, {transform_indices = @transform_3, window_bounds = array<i64: 128, 32>}]} {
    %c0 = arith.constant 0 : index
    %c0_0 = arith.constant 0 : index
    %0 = vector.load %arg1[%c0, %c0_0] : memref<128x256xbf16, #tpu.memory_space<vmem>>, vector<128x256xbf16>
    %c0_1 = arith.constant 0 : index
    %c0_2 = arith.constant 0 : index
    %1 = vector.load %arg2[%c0_1, %c0_2] : memref<256x32xbf16, #tpu.memory_space<vmem>>, vector<256x32xbf16>
    %cst = arith.constant dense<0.000000e+00> : vector<128x32xf32>
    %2 = tpu.matmul %0, %1, %cst {dimension_numbers = #tpu.dot_dimension_numbers<[1], [0], [0], [1], [0, 0, 1, 1], [], []>} : vector<128x256xbf16>, vector<256x32xbf16>, vector<128x32xf32> -> vector<128x32xf32>
    %c0_3 = arith.constant 0 : index
    %c0_4 = arith.constant 0 : index
    %3 = vector.load %arg3[%c0_3, %c0_4] : memref<1x32xf32, #tpu.memory_space<vmem>>, vector<1x32xf32>
    %4 = vector.broadcast %3 : vector<1x32xf32> to vector<128x32xf32>
    %5 = arith.addf %2, %4 : vector<128x32xf32>
    %cst_5 = arith.constant 0.000000e+00 : f32
    %6 = vector.broadcast %cst_5 : f32 to vector<128x32xf32>
    %7 = arith.cmpf oge, %5, %6 : vector<128x32xf32>
    %cst_6 = arith.constant 2.000000e-01 : f32
    %8 = vector.broadcast %cst_6 : f32 to vector<128x32xf32>
    %9 = arith.mulf %8, %5 : vector<128x32xf32>
    %10 = arith.select %7, %5, %9 : vector<128x32xi1>, vector<128x32xf32>
    %11 = arith.truncf %10 : vector<128x32xf32> to vector<128x32xbf16>
    %c0_7 = arith.constant 0 : index
    %c0_8 = arith.constant 0 : index
    %12 = vector.load %arg4[%c0_7, %c0_8] : memref<128x32xbf16, #tpu.memory_space<vmem>>, vector<128x32xbf16>
    tpu.vector_store %arg4[%c0_7, %c0_8], %11 {strides = array<i32>} : memref<128x32xbf16, #tpu.memory_space<vmem>>, vector<128x32xbf16>,
    return
  }
  func.func @transform_0(%arg0: i32) -> (i32, i32) {
    %c0_i32 = arith.constant 0 : i32
    %c0_i32_0 = arith.constant 0 : i32
    return %arg0, %c0_i32 : i32, i32
  }
  func.func @transform_1(%arg0: i32) -> (i32, i32) {
    %c0_i32 = arith.constant 0 : i32
    %c0_i32_0 = arith.constant 0 : i32
    %c0_i32_1 = arith.constant 0 : i32
    return %c0_i32, %c0_i32_0 : i32, i32
  }
  func.func @transform_2(%arg0: i32) -> (i32, i32) {
    %c0_i32 = arith.constant 0 : i32
    %c0_i32_0 = arith.constant 0 : i32
    %c0_i32_1 = arith.constant 0 : i32
    return %c0_i32, %c0_i32_0 : i32, i32
  }
  func.func @transform_3(%arg0: i32) -> (i32, i32) {
    %c0_i32 = arith.constant 0 : i32
    %c0_i32_0 = arith.constant 0 : i32
    return %arg0, %c0_i32 : i32, i32
  }
}

module attributes {stable_mosaic.version = 11 : i64} {
  func.func @_tail_kernel(%arg0: i32, %arg1: memref<32x512xbf16, #tpu.memory_space<vmem>>, %arg2: memref<512x64xbf16, #tpu.memory_space<vmem>>, %arg3: memref<1x64xf32, #tpu.memory_space<vmem>>, %arg4: memref<32x64xf32, #tpu.memory_space<vmem>>, %arg5: memref<2x32xf32, #tpu.memory_space<vmem>>, %arg6: memref<2x1xf32, #tpu.memory_space<vmem>>) attributes {dimension_semantics = [#tpu.dimension_semantics<arbitrary>], iteration_bounds = array<i64: 1>, scalar_prefetch = 0 : i64, scratch_operands = 0 : i64, tpu.core_type = #tpu.core_type<tc>, window_params = [{pipeline_mode = #tpu.pipeline_mode<synchronous>, transform_indices = @transform_0, window_bounds = array<i64: 32, 512>}, {pipeline_mode = #tpu.pipeline_mode<synchronous>, transform_indices = @transform_1, window_bounds = array<i64: 512, 64>}, {pipeline_mode = #tpu.pipeline_mode<synchronous>, transform_indices = @transform_2, window_bounds = array<i64: 1, 64>}, {pipeline_mode = #tpu.pipeline_mode<synchronous>, transform_indices = @transform_3, window_bounds = array<i64: 32, 64>}, {pipeline_mode = #tpu.pipeline_mode<synchronous>, transform_indices = @transform_4, window_bounds = array<i64: 2, 32>}, {pipeline_mode = #tpu.pipeline_mode<synchronous>, transform_indices = @transform_5, window_bounds = array<i64: 2, 1>}]} {
    %c0 = arith.constant 0 : index
    %c0_0 = arith.constant 0 : index
    %0 = vector.load %arg1[%c0, %c0_0] : memref<32x512xbf16, #tpu.memory_space<vmem>>, vector<32x512xbf16>
    %c0_1 = arith.constant 0 : index
    %c0_2 = arith.constant 0 : index
    %1 = vector.load %arg2[%c0_1, %c0_2] : memref<512x64xbf16, #tpu.memory_space<vmem>>, vector<512x64xbf16>
    %cst = arith.constant dense<0.000000e+00> : vector<32x64xf32>
    %2 = tpu.matmul %0, %1, %cst {dimension_numbers = #tpu.dot_dimension_numbers<[1], [0], [0], [1], [0, 0, 1, 1], [], []>} : vector<32x512xbf16>, vector<512x64xbf16>, vector<32x64xf32> -> vector<32x64xf32>
    %c0_3 = arith.constant 0 : index
    %c0_4 = arith.constant 0 : index
    %3 = vector.load %arg3[%c0_3, %c0_4] : memref<1x64xf32, #tpu.memory_space<vmem>>, vector<1x64xf32>
    %4 = vector.broadcast %3 : vector<1x64xf32> to vector<32x64xf32>
    %5 = arith.addf %2, %4 : vector<32x64xf32>
    %cst_5 = arith.constant 0.000000e+00 : f32
    %6 = vector.broadcast %cst_5 : f32 to vector<32x64xf32>
    %7 = arith.cmpf oge, %5, %6 : vector<32x64xf32>
    %cst_6 = arith.constant 2.000000e-01 : f32
    %8 = vector.broadcast %cst_6 : f32 to vector<32x64xf32>
    %9 = arith.mulf %8, %5 : vector<32x64xf32>
    %10 = arith.select %7, %5, %9 : vector<32x64xi1>, vector<32x64xf32>
    %c0_7 = arith.constant 0 : index
    %c0_8 = arith.constant 0 : index
    %11 = vector.load %arg4[%c0_7, %c0_8] : memref<32x64xf32, #tpu.memory_space<vmem>>, vector<32x64xf32>
    %12 = arith.mulf %10, %11 : vector<32x64xf32>
    %c0_9 = arith.constant 0 : index
    %c0_10 = arith.constant 0 : index
    %13 = vector.load %arg5[%c0_9, %c0_10] : memref<2x32xf32, #tpu.memory_space<vmem>>, vector<2x32xf32>
    %cst_11 = arith.constant dense<0.000000e+00> : vector<2x64xf32>
    %14 = tpu.matmul %13, %12, %cst_11 {dimension_numbers = #tpu.dot_dimension_numbers<[1], [0], [0], [1], [0, 0, 1, 1], [], []>} : vector<2x32xf32>, vector<32x64xf32>, vector<2x64xf32> -> vector<2x64xf32>
    %cst_12 = arith.constant dense<0.000000e+00> : vector<2xf32>
    %15 = vector.multi_reduction <add>, %14, %cst_12 [1] : vector<2x64xf32> to vector<2xf32>
    %16 = vector.shape_cast %15 : vector<2xf32> to vector<2x1xf32>
    %cst_13 = arith.constant 0.000000e+00 : f32
    %17 = vector.broadcast %cst_13 : f32 to vector<2x1xf32>
    %18 = arith.subf %17, %16 : vector<2x1xf32>
    %19 = math.exp %18 : vector<2x1xf32>
    %cst_14 = arith.constant 1.000000e+00 : f32
    %20 = vector.broadcast %cst_14 : f32 to vector<2x1xf32>
    %21 = arith.addf %20, %19 : vector<2x1xf32>
    %cst_15 = arith.constant 1.000000e+00 : f32
    %22 = vector.broadcast %cst_15 : f32 to vector<2x1xf32>
    %23 = arith.divf %22, %21 : vector<2x1xf32>
    %c0_16 = arith.constant 0 : index
    %c0_17 = arith.constant 0 : index
    %24 = vector.load %arg6[%c0_16, %c0_17] : memref<2x1xf32, #tpu.memory_space<vmem>>, vector<2x1xf32>
    tpu.vector_store %arg6[%c0_16, %c0_17], %23 {strides = array<i32>} : memref<2x1xf32, #tpu.memory_space<vmem>>, vector<2x1xf32>,
    return
  }
  func.func @transform_0(%arg0: i32) -> (i32, i32) {
    %c0_i32 = arith.constant 0 : i32
    %c0_i32_0 = arith.constant 0 : i32
    %c0_i32_1 = arith.constant 0 : i32
    return %c0_i32, %c0_i32_0 : i32, i32
  }
  func.func @transform_1(%arg0: i32) -> (i32, i32) {
    %c0_i32 = arith.constant 0 : i32
    %c0_i32_0 = arith.constant 0 : i32
    %c0_i32_1 = arith.constant 0 : i32
    return %c0_i32, %c0_i32_0 : i32, i32
  }
  func.func @transform_2(%arg0: i32) -> (i32, i32) {
    %c0_i32 = arith.constant 0 : i32
    %c0_i32_0 = arith.constant 0 : i32
    %c0_i32_1 = arith.constant 0 : i32
    return %c0_i32, %c0_i32_0 : i32, i32
  }
  func.func @transform_3(%arg0: i32) -> (i32, i32) {
    %c0_i32 = arith.constant 0 : i32
    %c0_i32_0 = arith.constant 0 : i32
    %c0_i32_1 = arith.constant 0 : i32
    return %c0_i32, %c0_i32_0 : i32, i32
  }
  func.func @transform_4(%arg0: i32) -> (i32, i32) {
    %c0_i32 = arith.constant 0 : i32
    %c0_i32_0 = arith.constant 0 : i32
    %c0_i32_1 = arith.constant 0 : i32
    return %c0_i32, %c0_i32_0 : i32, i32
  }
  func.func @transform_5(%arg0: i32) -> (i32, i32) {
    %c0_i32 = arith.constant 0 : i32
    %c0_i32_0 = arith.constant 0 : i32
    %c0_i32_1 = arith.constant 0 : i32
    return %c0_i32, %c0_i32_0 : i32, i32
  }
}

</mosaic_0001>

<bundles_post_ra>
// kernel: discriminator_forward.4
= control target key start
LH: loop header
LB: loop body
LE: loop exit
PB: predicated region body
PF: predicated region fallthrough
CT: control target
= control target key end

     0   :  { %s1334_s12 = smov 0   ;;  %s1632_s0 = inlined_call_operand.vmem [shape: bf16[2048,48], index: 0, kind: input, shape index: {}]   ;;  %s1633_s1 = inlined_call_operand.vmem [shape: bf16[48,8], index: 1, kind: input, shape index: {}]   ;;  %s1634_s2 = inlined_call_operand.vmem [shape: f32[1,8], index: 2, kind: input, shape index: {}]   ;;  %s1635_s3 = inlined_call_operand.vmem [shape: bf16[2048,8], index: 3, kind: output, shape index: {}]  }
   0x1 LB: > { %s1070_s13 = sadd.s32 4294967295, %s1312_s12   ;;  %p1074_p0 = scmp.ge.s32.totalorder %s1312_s12, 1  ;;  %s1312_s12 = sphi %s1334_s12, %s13_s12  }
   0x2   : > { %p138_p1 = scmp.lt.s32.totalorder %s1312_s12, 5 }
   0x4   : > { %p139_p2 = pnand %p1074_p0, %p138_p1 }
   0x5   : > { %s1075_s16 = sshll.u32 (!%p139_p2), %s1070_s13, 6 }
   0x6   : > { %142 = sbr.rel (%p139_p2) target bundleno = 285 (0x11d), region = 32  ;;  %p163_p3 = scmp.lt.s32.totalorder (!%p139_p2), %s1075_s16, 255 }
   0xb   : > { %v1287_v0 = vld [vmem:[%s1633_s1 + $0x10] sm:$0xff]  ;;  %v1286_v1 = vld [vmem:[%s1633_s1 + $0x8] sm:$0xff]  ;;  %s1637_s16 = smov (!%p163_p3, %s1075_s16), 255  ;;  %v1285_v2 = vld [vmem:[%s1633_s1] sm:$0xff]  ;;  %vm427_vm0 = vcmask 392192   ;;  %vm949_vm3 = vcmask 60416  }
   0xc   : > { %529 = vmatpush.bf16.msra.mxu0 %v1287_v0  ;;  %1288 = vmatpush.bf16.msra.mxu1 %v1287_v0  ;;  %s1076_s19 = sshll.u32 %s1637_s16, 2  ;;  %v1428_v35 = vld [vmem:[%s1634_s2] ss:$0 sm:$0xff] }
   0xd   : > { %1289 = vmatpush.bf16.msra.mxu2 %v1287_v0  ;;  %1290 = vmatpush.bf16.msra.mxu3 %v1287_v0  ;;  %s1359_s24 = scalar_lea.vmem %s1632_s0, %s1076_s19  ;;  %s1437_s29 = scalar_lea.vmem %s1635_s3, %s1076_s19 }
   0xe   : > { %v1253_v3 = vld [vmem:[%s1359_s24] sm:$0xff]  ;;  %v1254_v7 = vld [vmem:[%s1359_s24 + $0x8] sm:$0xff]  ;;  %v1255_v11 = vld [vmem:[%s1359_s24 + $0x10] sm:$0xff] }
   0xf   : > { %v1261_v4 = vld [vmem:[%s1359_s24 + $0x40] sm:$0xff]  ;;  %v1262_v8 = vld [vmem:[%s1359_s24 + $0x48] sm:$0xff]  ;;  %v1263_v12 = vld [vmem:[%s1359_s24 + $0x50] sm:$0xff] }
  0x10   : > { %530 = vmatpush.bf16.msra.mxu0 %v1286_v1  ;;  %1291 = vmatpush.bf16.msra.mxu1 %v1286_v1  ;;  %v1269_v5 = vld [vmem:[%s1359_s24 + $0x80] sm:$0xff]  ;;  %v1270_v9 = vld [vmem:[%s1359_s24 + $0x88] sm:$0xff]  ;;  %v1271_v13 = vld [vmem:[%s1359_s24 + $0x90] sm:$0xff] }
  0x11   : > { %1292 = vmatpush.bf16.msra.mxu2 %v1286_v1  ;;  %1293 = vmatpush.bf16.msra.mxu3 %v1286_v1  ;;  %v1277_v6 = vld [vmem:[%s1359_s24 + $0xc0] sm:$0xff]  ;;  %v1278_v10 = vld [vmem:[%s1359_s24 + $0xc8] sm:$0xff]  ;;  %v1279_v14 = vld [vmem:[%s1359_s24 + $0xd0] sm:$0xff] }
  0x12   : > { %v1256_v15 = vld [vmem:[%s1359_s24 + $0x18] sm:$0xff]  ;;  %v1257_v19 = vld [vmem:[%s1359_s24 + $0x20] sm:$0xff]  ;;  %v1258_v23 = vld [vmem:[%s1359_s24 + $0x28] sm:$0xff] }
  0x13   : > { %v1264_v16 = vld [vmem:[%s1359_s24 + $0x58] sm:$0xff]  ;;  %v1265_v20 = vld [vmem:[%s1359_s24 + $0x60] sm:$0xff]  ;;  %v1266_v24 = vld [vmem:[%s1359_s24 + $0x68] sm:$0xff] }
  0x14   : > { %531 = vmatpush.bf16.msra.mxu0 %v1285_v2  ;;  %1294 = vmatpush.bf16.msra.mxu1 %v1285_v2  ;;  %v1272_v17 = vld [vmem:[%s1359_s24 + $0x98] sm:$0xff]  ;;  %v1273_v21 = vld [vmem:[%s1359_s24 + $0xa0] sm:$0xff]  ;;  %v1274_v25 = vld [vmem:[%s1359_s24 + $0xa8] sm:$0xff] }
  0x15   : > { %1295 = vmatpush.bf16.msra.mxu2 %v1285_v2  ;;  %1296 = vmatpush.bf16.msra.mxu3 %v1285_v2  ;;  %v1280_v18 = vld [vmem:[%s1359_s24 + $0xd8] sm:$0xff]  ;;  %v1281_v22 = vld [vmem:[%s1359_s24 + $0xe0] sm:$0xff]  ;;  %v1282_v26 = vld [vmem:[%s1359_s24 + $0xe8] sm:$0xff] }
  0x16   : > { %v1259_v27 = vld [vmem:[%s1359_s24 + $0x30] sm:$0xff]  ;;  %v1260_v31 = vld [vmem:[%s1359_s24 + $0x38] sm:$0xff] }
  0x17   : > { %1219 = vmatmul.msk.bf16.vlgmr.msra.gmra.mxu0 %vm427_vm0, %v1253_v3  ;;  %1227 = vmatmul.msk.bf16.vlgmr.msra.gmra.mxu1 %vm427_vm0, %v1261_v4  ;;  %v1267_v28 = vld [vmem:[%s1359_s24 + $0x70] sm:$0xff]  ;;  %v1268_v32 = vld [vmem:[%s1359_s24 + $0x78] sm:$0xff] }
  0x18   : > { %1235 = vmatmul.msk.bf16.vlgmr.msra.gmra.mxu2 %vm427_vm0, %v1269_v5  ;;  %1243 = vmatmul.msk.bf16.vlgmr.msra.gmra.mxu3 %vm427_vm0, %v1277_v6  ;;  %v1275_v29 = vld [vmem:[%s1359_s24 + $0xb0] sm:$0xff]  ;;  %v1276_v33 = vld [vmem:[%s1359_s24 + $0xb8] sm:$0xff] }
  0x19   : > { %v1283_v30 = vld [vmem:[%s1359_s24 + $0xf0] sm:$0xff]  ;;  %v1284_v34 = vld [vmem:[%s1359_s24 + $0xf8] sm:$0xff] }
  0x27   : > { %1220 = vmatmul.msk.bf16.gmra.mxu0 %vm427_vm0, %v1254_v7  ;;  %1228 = vmatmul.msk.bf16.gmra.mxu1 %vm427_vm0, %v1262_v8 }
  0x28   : > { %1236 = vmatmul.msk.bf16.gmra.mxu2 %vm427_vm0, %v1270_v9  ;;  %1244 = vmatmul.msk.bf16.gmra.mxu3 %vm427_vm0, %v1278_v10 }
  0x37   : > { %1221 = vmatmul.msk.bf16.gmra.mxu0 %vm427_vm0, %v1255_v11  ;;  %1229 = vmatmul.msk.bf16.gmra.mxu1 %vm427_vm0, %v1263_v12 }
  0x38   : > { %1237 = vmatmul.msk.bf16.gmra.mxu2 %vm427_vm0, %v1271_v13  ;;  %1245 = vmatmul.msk.bf16.gmra.mxu3 %vm427_vm0, %v1279_v14 }
  0x47   : > { %1222 = vmatmul.msk.bf16.gmra.mxu0 %vm427_vm0, %v1256_v15  ;;  %1230 = vmatmul.msk.bf16.gmra.mxu1 %vm427_vm0, %v1264_v16 }
  0x48   : > { %1238 = vmatmul.msk.bf16.gmra.mxu2 %vm427_vm0, %v1272_v17  ;;  %1246 = vmatmul.msk.bf16.gmra.mxu3 %vm427_vm0, %v1280_v18 }
  0x57   : > { %1223 = vmatmul.msk.bf16.gmra.mxu0 %vm427_vm0, %v1257_v19  ;;  %1231 = vmatmul.msk.bf16.gmra.mxu1 %vm427_vm0, %v1265_v20 }
  0x58   : > { %1239 = vmatmul.msk.bf16.gmra.mxu2 %vm427_vm0, %v1273_v21  ;;  %1247 = vmatmul.msk.bf16.gmra.mxu3 %vm427_vm0, %v1281_v22 }
  0x67   : > { %1224 = vmatmul.msk.bf16.gmra.mxu0 %vm427_vm0, %v1258_v23  ;;  %1232 = vmatmul.msk.bf16.gmra.mxu1 %vm427_vm0, %v1266_v24 }
  0x68   : > { %1240 = vmatmul.msk.bf16.gmra.mxu2 %vm427_vm0, %v1274_v25  ;;  %1248 = vmatmul.msk.bf16.gmra.mxu3 %vm427_vm0, %v1282_v26 }
  0x77   : > { %1225 = vmatmul.msk.bf16.gmra.mxu0 %vm427_vm0, %v1259_v27  ;;  %1233 = vmatmul.msk.bf16.gmra.mxu1 %vm427_vm0, %v1267_v28 }
  0x78   : > { %1241 = vmatmul.msk.bf16.gmra.mxu2 %vm427_vm0, %v1275_v29  ;;  %1249 = vmatmul.msk.bf16.gmra.mxu3 %vm427_vm0, %v1283_v30 }
  0x87   : > { %1226 = vmatmul.msk.bf16.gmra.mxu0 %vm427_vm0, %v1260_v31  ;;  %1234 = vmatmul.msk.bf16.gmra.mxu1 %vm427_vm0, %v1268_v32 }
  0x88   : > { %1242 = vmatmul.msk.bf16.gmra.mxu2 %vm427_vm0, %v1276_v33  ;;  %1250 = vmatmul.msk.bf16.gmra.mxu3 %vm427_vm0, %v1284_v34 }
  0x94   : > { %v533_v36 = vpop.f32.mrf.mxu0  ;;  %v573_v37 = vpop.f32.mrf.mxu1 }
  0x95   : > { %v534_v38 = vadd.f32 %v1428_v35, %v533_v36  ;;  %v574_v39 = vadd.f32 %v1428_v35, %v573_v37 }
  0x97   : > { %vm693_vm1 = vcmp.ge.f32.partialorder %v534_v38, 0.0  ;;  %v757_v40 = vmul.f32 0.2, %v534_v38  ;;  %vm709_vm2 = vcmp.ge.f32.partialorder %v574_v39, 0.0  ;;  %v773_v41 = vmul.f32 0.2, %v574_v39 }
  0x99   : > { %v821_v42 = vsel %vm693_vm1, %v534_v38, %v757_v40  ;;  %v837_v43 = vsel %vm709_vm2, %v574_v39, %v773_v41 }
  0x9a   : > { %v885_v44 = vpack.c.bf16 %v821_v42, %v821_v42  ;;  %v901_v45 = vpack.c.bf16 %v837_v43, %v837_v43 }
  0x9b   : > { %v613_v46 = vpop.f32.mrf.mxu2  ;;  %v653_v47 = vpop.f32.mrf.mxu3 }
  0x9c   : > { %950 = vst.msk [vmem:[%s1437_s29] sm:$0xf] %vm949_vm3, %v885_v44  ;;  %v614_v48 = vadd.f32 %v1428_v35, %v613_v46  ;;  %v654_v49 = vadd.f32 %v1428_v35, %v653_v47  ;;  %v535_v50 = vpop.f32.mrf.mxu0  ;;  %v575_v51 = vpop.f32.mrf.mxu1 }
  0x9d   : > { %966 = vst.msk [vmem:[%s1437_s29 + $0x40] sm:$0xf] %vm949_vm3, %v901_v45  ;;  %v536_v52 = vadd.f32 %v1428_v35, %v535_v50  ;;  %v576_v53 = vadd.f32 %v1428_v35, %v575_v51 }
  0x9e   : > { %vm725_vm4 = vcmp.ge.f32.partialorder %v614_v48, 0.0  ;;  %v789_v54 = vmul.f32 0.2, %v614_v48  ;;  %vm741_vm5 = vcmp.ge.f32.partialorder %v654_v49, 0.0  ;;  %v805_v55 = vmul.f32 0.2, %v654_v49 }
  0x9f   : > { %vm694_vm6 = vcmp.ge.f32.partialorder %v536_v52, 0.0  ;;  %v758_v56 = vmul.f32 0.2, %v536_v52  ;;  %vm710_vm7 = vcmp.ge.f32.partialorder %v576_v53, 0.0  ;;  %v774_v57 = vmul.f32 0.2, %v576_v53 }
  0xa0   : > { %v853_v58 = vsel %vm725_vm4, %v614_v48, %v789_v54  ;;  %v869_v59 = vsel %vm741_vm5, %v654_v49, %v805_v55 }
  0xa1   : > { %v917_v60 = vpack.c.bf16 %v853_v58, %v853_v58  ;;  %v933_v61 = vpack.c.bf16 %v869_v59, %v869_v59  ;;  %v822_v62 = vsel %vm694_vm6, %v536_v52, %v758_v56  ;;  %v838_v63 = vsel %vm710_vm7, %v576_v53, %v774_v57 }
  0xa2   : > { %v886_v0 = vpack.c.bf16 %v822_v62, %v822_v62  ;;  %v902_v1 = vpack.c.bf16 %v838_v63, %v838_v63 }
  0xa3   : > { %982 = vst.msk [vmem:[%s1437_s29 + $0x80] sm:$0xf] %vm949_vm3, %v917_v60  ;;  %v615_v2 = vpop.f32.mrf.mxu2  ;;  %v655_v3 = vpop.f32.mrf.mxu3 }
  0xa4   : > { %998 = vst.msk [vmem:[%s1437_s29 + $0xc0] sm:$0xf] %vm949_vm3, %v933_v61  ;;  %v616_v4 = vadd.f32 %v1428_v35, %v615_v2  ;;  %v656_v5 = vadd.f32 %v1428_v35, %v655_v3  ;;  %v538_v6 = vpop.f32.mrf.mxu0  ;;  %v578_v7 = vpop.f32.mrf.mxu1 }
  0xa5   : > { %951 = vst.msk [vmem:[%s1437_s29 + $0x4] sm:$0xf] %vm949_vm3, %v886_v0  ;;  %v539_v8 = vadd.f32 %v1428_v35, %v538_v6  ;;  %v579_v9 = vadd.f32 %v1428_v35, %v578_v7 }
  0xa6   : > { %967 = vst.msk [vmem:[%s1437_s29 + $0x44] sm:$0xf] %vm949_vm3, %v902_v1  ;;  %vm726_vm8 = vcmp.ge.f32.partialorder %v616_v4, 0.0  ;;  %v790_v10 = vmul.f32 0.2, %v616_v4  ;;  %vm742_vm9 = vcmp.ge.f32.partialorder %v656_v5, 0.0 }
  0xa7   : > { %v806_v11 = vmul.f32 0.2, %v656_v5  ;;  %vm695_vm10 = vcmp.ge.f32.partialorder %v539_v8, 0.0  ;;  %v759_v12 = vmul.f32 0.2, %v539_v8  ;;  %vm711_vm11 = vcmp.ge.f32.partialorder %v579_v9, 0.0 }
  0xa8   : > { %v854_v13 = vsel %vm726_vm8, %v616_v4, %v790_v10  ;;  %v775_v14 = vmul.f32 0.2, %v579_v9 }
  0xa9   : > { %v918_v15 = vpack.c.bf16 %v854_v13, %v854_v13  ;;  %v870_v16 = vsel %vm742_vm9, %v656_v5, %v806_v11  ;;  %v823_v17 = vsel %vm695_vm10, %v539_v8, %v759_v12 }
  0xaa   : > { %v934_v18 = vpack.c.bf16 %v870_v16, %v870_v16  ;;  %v887_v19 = vpack.c.bf16 %v823_v17, %v823_v17  ;;  %v839_v20 = vsel %vm711_vm11, %v579_v9, %v775_v14 }
  0xab   : > { %983 = vst.msk [vmem:[%s1437_s29 + $0x84] sm:$0xf] %vm949_vm3, %v918_v15  ;;  %v903_v21 = vpack.c.bf16 %v839_v20, %v839_v20  ;;  %v618_v22 = vpop.f32.mrf.mxu2  ;;  %v658_v23 = vpop.f32.mrf.mxu3 }
  0xac   : > { %999 = vst.msk [vmem:[%s1437_s29 + $0xc4] sm:$0xf] %vm949_vm3, %v934_v18  ;;  %v619_v24 = vadd.f32 %v1428_v35, %v618_v22  ;;  %v659_v25 = vadd.f32 %v1428_v35, %v658_v23  ;;  %v540_v26 = vpop.f32.mrf.mxu0  ;;  %v580_v27 = vpop.f32.mrf.mxu1 }
  0xad   : > { %952 = vst.msk [vmem:[%s1437_s29 + $0x8] sm:$0xf] %vm949_vm3, %v887_v19  ;;  %v541_v28 = vadd.f32 %v1428_v35, %v540_v26  ;;  %v581_v29 = vadd.f32 %v1428_v35, %v580_v27 }
  0xae   : > { %968 = vst.msk [vmem:[%s1437_s29 + $0x48] sm:$0xf] %vm949_vm3, %v903_v21  ;;  %vm727_vm12 = vcmp.ge.f32.partialorder %v619_v24, 0.0  ;;  %v791_v30 = vmul.f32 0.2, %v619_v24  ;;  %vm743_vm13 = vcmp.ge.f32.partialorder %v659_v25, 0.0 }
  0xaf   : > { %v807_v31 = vmul.f32 0.2, %v659_v25  ;;  %vm696_vm14 = vcmp.ge.f32.partialorder %v541_v28, 0.0  ;;  %v760_v32 = vmul.f32 0.2, %v541_v28  ;;  %vm712_vm15 = vcmp.ge.f32.partialorder %v581_v29, 0.0 }
  0xb0   : > { %v855_v33 = vsel %vm727_vm12, %v619_v24, %v791_v30  ;;  %v776_v34 = vmul.f32 0.2, %v581_v29 }
  0xb1   : > { %v919_v36 = vpack.c.bf16 %v855_v33, %v855_v33  ;;  %v871_v37 = vsel %vm743_vm13, %v659_v25, %v807_v31  ;;  %v824_v38 = vsel %vm696_vm14, %v541_v28, %v760_v32 }
  0xb2   : > { %v935_v39 = vpack.c.bf16 %v871_v37, %v871_v37  ;;  %v888_v40 = vpack.c.bf16 %v824_v38, %v824_v38  ;;  %v840_v41 = vsel %vm712_vm15, %v581_v29, %v776_v34 }
  0xb3   : > { %984 = vst.msk [vmem:[%s1437_s29 + $0x88] sm:$0xf] %vm949_vm3, %v919_v36  ;;  %v904_v42 = vpack.c.bf16 %v840_v41, %v840_v41  ;;  %v620_v43 = vpop.f32.mrf.mxu2  ;;  %v660_v44 = vpop.f32.mrf.mxu3 }
  0xb4   : > { %1000 = vst.msk [vmem:[%s1437_s29 + $0xc8] sm:$0xf] %vm949_vm3, %v935_v39  ;;  %v621_v45 = vadd.f32 %v1428_v35, %v620_v43  ;;  %v661_v46 = vadd.f32 %v1428_v35, %v660_v44  ;;  %v543_v47 = vpop.f32.mrf.mxu0  ;;  %v583_v48 = vpop.f32.mrf.mxu1 }
  0xb5   : > { %953 = vst.msk [vmem:[%s1437_s29 + $0xc] sm:$0xf] %vm949_vm3, %v888_v40  ;;  %v544_v49 = vadd.f32 %v1428_v35, %v543_v47  ;;  %v584_v50 = vadd.f32 %v1428_v35, %v583_v48 }
  0xb6   : > { %969 = vst.msk [vmem:[%s1437_s29 + $0x4c] sm:$0xf] %vm949_vm3, %v904_v42  ;;  %vm728_vm0 = vcmp.ge.f32.partialorder %v621_v45, 0.0  ;;  %v792_v51 = vmul.f32 0.2, %v621_v45  ;;  %vm744_vm1 = vcmp.ge.f32.partialorder %v661_v46, 0.0 }
  0xb7   : > { %v808_v52 = vmul.f32 0.2, %v661_v46  ;;  %vm697_vm2 = vcmp.ge.f32.partialorder %v544_v49, 0.0  ;;  %v761_v53 = vmul.f32 0.2, %v544_v49  ;;  %vm713_vm4 = vcmp.ge.f32.partialorder %v584_v50, 0.0 }
  0xb8   : > { %v856_v54 = vsel %vm728_vm0, %v621_v45, %v792_v51  ;;  %v777_v55 = vmul.f32 0.2, %v584_v50 }
  0xb9   : > { %v920_v56 = vpack.c.bf16 %v856_v54, %v856_v54  ;;  %v872_v57 = vsel %vm744_vm1, %v661_v46, %v808_v52  ;;  %v825_v58 = vsel %vm697_vm2, %v544_v49, %v761_v53 }
  0xba   : > { %v936_v59 = vpack.c.bf16 %v872_v57, %v872_v57  ;;  %v889_v60 = vpack.c.bf16 %v825_v58, %v825_v58  ;;  %v841_v61 = vsel %vm713_vm4, %v584_v50, %v777_v55 }
  0xbb   : > { %985 = vst.msk [vmem:[%s1437_s29 + $0x8c] sm:$0xf] %vm949_vm3, %v920_v56  ;;  %v905_v62 = vpack.c.bf16 %v841_v61, %v841_v61  ;;  %v623_v63 = vpop.f32.mrf.mxu2  ;;  %v663_v0 = vpop.f32.mrf.mxu3 }
  0xbc   : > { %1001 = vst.msk [vmem:[%s1437_s29 + $0xcc] sm:$0xf] %vm949_vm3, %v936_v59  ;;  %v624_v1 = vadd.f32 %v1428_v35, %v623_v63  ;;  %v664_v2 = vadd.f32 %v1428_v35, %v663_v0  ;;  %v545_v3 = vpop.f32.mrf.mxu0  ;;  %v585_v4 = vpop.f32.mrf.mxu1 }
  0xbd   : > { %954 = vst.msk [vmem:[%s1437_s29 + $0x10] sm:$0xf] %vm949_vm3, %v889_v60  ;;  %v546_v5 = vadd.f32 %v1428_v35, %v545_v3  ;;  %v586_v6 = vadd.f32 %v1428_v35, %v585_v4 }
  0xbe   : > { %970 = vst.msk [vmem:[%s1437_s29 + $0x50] sm:$0xf] %vm949_vm3, %v905_v62  ;;  %vm729_vm5 = vcmp.ge.f32.partialorder %v624_v1, 0.0  ;;  %v793_v7 = vmul.f32 0.2, %v624_v1  ;;  %vm745_vm6 = vcmp.ge.f32.partialorder %v664_v2, 0.0 }
  0xbf   : > { %v809_v8 = vmul.f32 0.2, %v664_v2  ;;  %vm698_vm7 = vcmp.ge.f32.partialorder %v546_v5, 0.0  ;;  %v762_v9 = vmul.f32 0.2, %v546_v5  ;;  %vm714_vm8 = vcmp.ge.f32.partialorder %v586_v6, 0.0 }
  0xc0   : > { %v857_v10 = vsel %vm729_vm5, %v624_v1, %v793_v7  ;;  %v778_v11 = vmul.f32 0.2, %v586_v6 }
  0xc1   : > { %v921_v12 = vpack.c.bf16 %v857_v10, %v857_v10  ;;  %v873_v13 = vsel %vm745_vm6, %v664_v2, %v809_v8  ;;  %v826_v14 = vsel %vm698_vm7, %v546_v5, %v762_v9 }
  0xc2   : > { %v937_v15 = vpack.c.bf16 %v873_v13, %v873_v13  ;;  %v890_v16 = vpack.c.bf16 %v826_v14, %v826_v14  ;;  %v842_v17 = vsel %vm714_vm8, %v586_v6, %v778_v11 }
  0xc3   : > { %986 = vst.msk [vmem:[%s1437_s29 + $0x90] sm:$0xf] %vm949_vm3, %v921_v12  ;;  %v906_v18 = vpack.c.bf16 %v842_v17, %v842_v17  ;;  %v625_v19 = vpop.f32.mrf.mxu2  ;;  %v665_v20 = vpop.f32.mrf.mxu3 }
  0xc4   : > { %1002 = vst.msk [vmem:[%s1437_s29 + $0xd0] sm:$0xf] %vm949_vm3, %v937_v15  ;;  %v626_v21 = vadd.f32 %v1428_v35, %v625_v19  ;;  %v666_v22 = vadd.f32 %v1428_v35, %v665_v20  ;;  %v548_v23 = vpop.f32.mrf.mxu0  ;;  %v588_v24 = vpop.f32.mrf.mxu1 }
  0xc5   : > { %955 = vst.msk [vmem:[%s1437_s29 + $0x14] sm:$0xf] %vm949_vm3, %v890_v16  ;;  %v549_v25 = vadd.f32 %v1428_v35, %v548_v23  ;;  %v589_v26 = vadd.f32 %v1428_v35, %v588_v24 }
  0xc6   : > { %971 = vst.msk [vmem:[%s1437_s29 + $0x54] sm:$0xf] %vm949_vm3, %v906_v18  ;;  %vm730_vm9 = vcmp.ge.f32.partialorder %v626_v21, 0.0  ;;  %v794_v27 = vmul.f32 0.2, %v626_v21  ;;  %vm746_vm10 = vcmp.ge.f32.partialorder %v666_v22, 0.0 }
  0xc7   : > { %v810_v28 = vmul.f32 0.2, %v666_v22  ;;  %vm699_vm11 = vcmp.ge.f32.partialorder %v549_v25, 0.0  ;;  %v763_v29 = vmul.f32 0.2, %v549_v25  ;;  %vm715_vm12 = vcmp.ge.f32.partialorder %v589_v26, 0.0 }
  0xc8   : > { %v858_v30 = vsel %vm730_vm9, %v626_v21, %v794_v27  ;;  %v779_v31 = vmul.f32 0.2, %v589_v26 }
  0xc9   : > { %v922_v32 = vpack.c.bf16 %v858_v30, %v858_v30  ;;  %v874_v33 = vsel %vm746_vm10, %v666_v22, %v810_v28  ;;  %v827_v34 = vsel %vm699_vm11, %v549_v25, %v763_v29 }
  0xca   : > { %v938_v36 = vpack.c.bf16 %v874_v33, %v874_v33  ;;  %v891_v37 = vpack.c.bf16 %v827_v34, %v827_v34  ;;  %v843_v38 = vsel %vm715_vm12, %v589_v26, %v779_v31 }
  0xcb   : > { %987 = vst.msk [vmem:[%s1437_s29 + $0x94] sm:$0xf] %vm949_vm3, %v922_v32  ;;  %v907_v39 = vpack.c.bf16 %v843_v38, %v843_v38  ;;  %v628_v40 = vpop.f32.mrf.mxu2  ;;  %v668_v41 = vpop.f32.mrf.mxu3 }
  0xcc   : > { %1003 = vst.msk [vmem:[%s1437_s29 + $0xd4] sm:$0xf] %vm949_vm3, %v938_v36  ;;  %v629_v42 = vadd.f32 %v1428_v35, %v628_v40  ;;  %v669_v43 = vadd.f32 %v1428_v35, %v668_v41  ;;  %v550_v44 = vpop.f32.mrf.mxu0  ;;  %v590_v45 = vpop.f32.mrf.mxu1 }
  0xcd   : > { %956 = vst.msk [vmem:[%s1437_s29 + $0x18] sm:$0xf] %vm949_vm3, %v891_v37  ;;  %v551_v46 = vadd.f32 %v1428_v35, %v550_v44  ;;  %v591_v47 = vadd.f32 %v1428_v35, %v590_v45 }
  0xce   : > { %972 = vst.msk [vmem:[%s1437_s29 + $0x58] sm:$0xf] %vm949_vm3, %v907_v39  ;;  %vm731_vm13 = vcmp.ge.f32.partialorder %v629_v42, 0.0  ;;  %v795_v48 = vmul.f32 0.2, %v629_v42  ;;  %vm747_vm14 = vcmp.ge.f32.partialorder %v669_v43, 0.0 }
  0xcf   : > { %v811_v49 = vmul.f32 0.2, %v669_v43  ;;  %vm700_vm15 = vcmp.ge.f32.partialorder %v551_v46, 0.0  ;;  %v764_v50 = vmul.f32 0.2, %v551_v46  ;;  %vm716_vm0 = vcmp.ge.f32.partialorder %v591_v47, 0.0 }
  0xd0   : > { %v859_v51 = vsel %vm731_vm13, %v629_v42, %v795_v48  ;;  %v780_v52 = vmul.f32 0.2, %v591_v47 }
  0xd1   : > { %v923_v53 = vpack.c.bf16 %v859_v51, %v859_v51  ;;  %v875_v54 = vsel %vm747_vm14, %v669_v43, %v811_v49  ;;  %v828_v55 = vsel %vm700_vm15, %v551_v46, %v764_v50 }
  0xd2   : > { %v939_v56 = vpack.c.bf16 %v875_v54, %v875_v54  ;;  %v892_v57 = vpack.c.bf16 %v828_v55, %v828_v55  ;;  %v844_v58 = vsel %vm716_vm0, %v591_v47, %v780_v52 }
  0xd3   : > { %988 = vst.msk [vmem:[%s1437_s29 + $0x98] sm:$0xf] %vm949_vm3, %v923_v53  ;;  %v908_v59 = vpack.c.bf16 %v844_v58, %v844_v58  ;;  %v630_v60 = vpop.f32.mrf.mxu2  ;;  %v670_v61 = vpop.f32.mrf.mxu3 }
  0xd4   : > { %1004 = vst.msk [vmem:[%s1437_s29 + $0xd8] sm:$0xf] %vm949_vm3, %v939_v56  ;;  %v631_v62 = vadd.f32 %v1428_v35, %v630_v60  ;;  %v671_v63 = vadd.f32 %v1428_v35, %v670_v61  ;;  %v553_v0 = vpop.f32.mrf.mxu0  ;;  %v593_v1 = vpop.f32.mrf.mxu1 }
  0xd5   : > { %957 = vst.msk [vmem:[%s1437_s29 + $0x1c] sm:$0xf] %vm949_vm3, %v892_v57  ;;  %v554_v2 = vadd.f32 %v1428_v35, %v553_v0  ;;  %v594_v3 = vadd.f32 %v1428_v35, %v593_v1 }
  0xd6   : > { %973 = vst.msk [vmem:[%s1437_s29 + $0x5c] sm:$0xf] %vm949_vm3, %v908_v59  ;;  %vm732_vm1 = vcmp.ge.f32.partialorder %v631_v62, 0.0  ;;  %v796_v4 = vmul.f32 0.2, %v631_v62  ;;  %vm748_vm2 = vcmp.ge.f32.partialorder %v671_v63, 0.0 }
  0xd7   : > { %v812_v5 = vmul.f32 0.2, %v671_v63  ;;  %vm701_vm4 = vcmp.ge.f32.partialorder %v554_v2, 0.0  ;;  %v765_v6 = vmul.f32 0.2, %v554_v2  ;;  %vm717_vm5 = vcmp.ge.f32.partialorder %v594_v3, 0.0 }
  0xd8   : > { %v860_v7 = vsel %vm732_vm1, %v631_v62, %v796_v4  ;;  %v781_v8 = vmul.f32 0.2, %v594_v3 }
  0xd9   : > { %v924_v9 = vpack.c.bf16 %v860_v7, %v860_v7  ;;  %v876_v10 = vsel %vm748_vm2, %v671_v63, %v812_v5  ;;  %v829_v11 = vsel %vm701_vm4, %v554_v2, %v765_v6 }
  0xda   : > { %v940_v12 = vpack.c.bf16 %v876_v10, %v876_v10  ;;  %v893_v13 = vpack.c.bf16 %v829_v11, %v829_v11  ;;  %v845_v14 = vsel %vm717_vm5, %v594_v3, %v781_v8 }
  0xdb   : > { %989 = vst.msk [vmem:[%s1437_s29 + $0x9c] sm:$0xf] %vm949_vm3, %v924_v9  ;;  %v909_v15 = vpack.c.bf16 %v845_v14, %v845_v14  ;;  %v633_v16 = vpop.f32.mrf.mxu2  ;;  %v673_v17 = vpop.f32.mrf.mxu3 }
  0xdc   : > { %1005 = vst.msk [vmem:[%s1437_s29 + $0xdc] sm:$0xf] %vm949_vm3, %v940_v12  ;;  %v634_v18 = vadd.f32 %v1428_v35, %v633_v16  ;;  %v674_v19 = vadd.f32 %v1428_v35, %v673_v17  ;;  %v555_v20 = vpop.f32.mrf.mxu0  ;;  %v595_v21 = vpop.f32.mrf.mxu1 }
  0xdd   : > { %958 = vst.msk [vmem:[%s1437_s29 + $0x20] sm:$0xf] %vm949_vm3, %v893_v13  ;;  %v556_v22 = vadd.f32 %v1428_v35, %v555_v20  ;;  %v596_v23 = vadd.f32 %v1428_v35, %v595_v21 }
  0xde   : > { %974 = vst.msk [vmem:[%s1437_s29 + $0x60] sm:$0xf] %vm949_vm3, %v909_v15  ;;  %vm733_vm6 = vcmp.ge.f32.partialorder %v634_v18, 0.0  ;;  %v797_v24 = vmul.f32 0.2, %v634_v18  ;;  %vm749_vm7 = vcmp.ge.f32.partialorder %v674_v19, 0.0 }
  0xdf   : > { %v813_v25 = vmul.f32 0.2, %v674_v19  ;;  %vm702_vm8 = vcmp.ge.f32.partialorder %v556_v22, 0.0  ;;  %v766_v26 = vmul.f32 0.2, %v556_v22  ;;  %vm718_vm9 = vcmp.ge.f32.partialorder %v596_v23, 0.0 }
  0xe0   : > { %v861_v27 = vsel %vm733_vm6, %v634_v18, %v797_v24  ;;  %v782_v28 = vmul.f32 0.2, %v596_v23 }
  0xe1   : > { %v925_v29 = vpack.c.bf16 %v861_v27, %v861_v27  ;;  %v877_v30 = vsel %vm749_vm7, %v674_v19, %v813_v25  ;;  %v830_v31 = vsel %vm702_vm8, %v556_v22, %v766_v26 }
  0xe2   : > { %v941_v32 = vpack.c.bf16 %v877_v30, %v877_v30  ;;  %v894_v33 = vpack.c.bf16 %v830_v31, %v830_v31  ;;  %v846_v34 = vsel %vm718_vm9, %v596_v23, %v782_v28 }
  0xe3   : > { %990 = vst.msk [vmem:[%s1437_s29 + $0xa0] sm:$0xf] %vm949_vm3, %v925_v29  ;;  %v910_v36 = vpack.c.bf16 %v846_v34, %v846_v34  ;;  %v635_v37 = vpop.f32.mrf.mxu2  ;;  %v675_v38 = vpop.f32.mrf.mxu3 }
  0xe4   : > { %1006 = vst.msk [vmem:[%s1437_s29 + $0xe0] sm:$0xf] %vm949_vm3, %v941_v32  ;;  %v636_v39 = vadd.f32 %v1428_v35, %v635_v37  ;;  %v676_v40 = vadd.f32 %v1428_v35, %v675_v38  ;;  %v558_v41 = vpop.f32.mrf.mxu0  ;;  %v598_v42 = vpop.f32.mrf.mxu1 }
  0xe5   : > { %959 = vst.msk [vmem:[%s1437_s29 + $0x24] sm:$0xf] %vm949_vm3, %v894_v33  ;;  %v559_v43 = vadd.f32 %v1428_v35, %v558_v41  ;;  %v599_v44 = vadd.f32 %v1428_v35, %v598_v42 }
  0xe6   : > { %975 = vst.msk [vmem:[%s1437_s29 + $0x64] sm:$0xf] %vm949_vm3, %v910_v36  ;;  %vm734_vm10 = vcmp.ge.f32.partialorder %v636_v39, 0.0  ;;  %v798_v45 = vmul.f32 0.2, %v636_v39  ;;  %vm750_vm11 = vcmp.ge.f32.partialorder %v676_v40, 0.0 }
  0xe7   : > { %v814_v46 = vmul.f32 0.2, %v676_v40  ;;  %vm703_vm12 = vcmp.ge.f32.partialorder %v559_v43, 0.0  ;;  %v767_v47 = vmul.f32 0.2, %v559_v43  ;;  %vm719_vm13 = vcmp.ge.f32.partialorder %v599_v44, 0.0 }
  0xe8   : > { %v862_v48 = vsel %vm734_vm10, %v636_v39, %v798_v45  ;;  %v783_v49 = vmul.f32 0.2, %v599_v44 }
  0xe9   : > { %v926_v50 = vpack.c.bf16 %v862_v48, %v862_v48  ;;  %v878_v51 = vsel %vm750_vm11, %v676_v40, %v814_v46  ;;  %v831_v52 = vsel %vm703_vm12, %v559_v43, %v767_v47 }
  0xea   : > { %v942_v53 = vpack.c.bf16 %v878_v51, %v878_v51  ;;  %v895_v54 = vpack.c.bf16 %v831_v52, %v831_v52  ;;  %v847_v55 = vsel %vm719_vm13, %v599_v44, %v783_v49 }
  0xeb   : > { %991 = vst.msk [vmem:[%s1437_s29 + $0xa4] sm:$0xf] %vm949_vm3, %v926_v50  ;;  %v911_v56 = vpack.c.bf16 %v847_v55, %v847_v55  ;;  %v638_v57 = vpop.f32.mrf.mxu2  ;;  %v678_v58 = vpop.f32.mrf.mxu3 }
  0xec   : > { %1007 = vst.msk [vmem:[%s1437_s29 + $0xe4] sm:$0xf] %vm949_vm3, %v942_v53  ;;  %v639_v59 = vadd.f32 %v1428_v35, %v638_v57  ;;  %v679_v60 = vadd.f32 %v1428_v35, %v678_v58  ;;  %v560_v61 = vpop.f32.mrf.mxu0  ;;  %v600_v62 = vpop.f32.mrf.mxu1 }
  0xed   : > { %960 = vst.msk [vmem:[%s1437_s29 + $0x28] sm:$0xf] %vm949_vm3, %v895_v54  ;;  %v561_v63 = vadd.f32 %v1428_v35, %v560_v61  ;;  %v601_v0 = vadd.f32 %v1428_v35, %v600_v62 }
  0xee   : > { %976 = vst.msk [vmem:[%s1437_s29 + $0x68] sm:$0xf] %vm949_vm3, %v911_v56  ;;  %vm735_vm14 = vcmp.ge.f32.partialorder %v639_v59, 0.0  ;;  %v799_v1 = vmul.f32 0.2, %v639_v59  ;;  %vm751_vm15 = vcmp.ge.f32.partialorder %v679_v60, 0.0 }
  0xef   : > { %v815_v2 = vmul.f32 0.2, %v679_v60  ;;  %vm704_vm0 = vcmp.ge.f32.partialorder %v561_v63, 0.0  ;;  %v768_v3 = vmul.f32 0.2, %v561_v63  ;;  %vm720_vm1 = vcmp.ge.f32.partialorder %v601_v0, 0.0 }
  0xf0   : > { %v863_v4 = vsel %vm735_vm14, %v639_v59, %v799_v1  ;;  %v784_v5 = vmul.f32 0.2, %v601_v0 }
  0xf1   : > { %v927_v6 = vpack.c.bf16 %v863_v4, %v863_v4  ;;  %v879_v7 = vsel %vm751_vm15, %v679_v60, %v815_v2  ;;  %v832_v8 = vsel %vm704_vm0, %v561_v63, %v768_v3 }
  0xf2   : > { %v943_v9 = vpack.c.bf16 %v879_v7, %v879_v7  ;;  %v896_v10 = vpack.c.bf16 %v832_v8, %v832_v8  ;;  %v848_v11 = vsel %vm720_vm1, %v601_v0, %v784_v5 }
  0xf3   : > { %992 = vst.msk [vmem:[%s1437_s29 + $0xa8] sm:$0xf] %vm949_vm3, %v927_v6  ;;  %v912_v12 = vpack.c.bf16 %v848_v11, %v848_v11  ;;  %v640_v13 = vpop.f32.mrf.mxu2  ;;  %v680_v14 = vpop.f32.mrf.mxu3 }
  0xf4   : > { %1008 = vst.msk [vmem:[%s1437_s29 + $0xe8] sm:$0xf] %vm949_vm3, %v943_v9  ;;  %v641_v15 = vadd.f32 %v1428_v35, %v640_v13  ;;  %v681_v16 = vadd.f32 %v1428_v35, %v680_v14  ;;  %v563_v17 = vpop.f32.mrf.mxu0  ;;  %v603_v18 = vpop.f32.mrf.mxu1 }
  0xf5   : > { %961 = vst.msk [vmem:[%s1437_s29 + $0x2c] sm:$0xf] %vm949_vm3, %v896_v10  ;;  %v564_v19 = vadd.f32 %v1428_v35, %v563_v17  ;;  %v604_v20 = vadd.f32 %v1428_v35, %v603_v18 }
  0xf6   : > { %977 = vst.msk [vmem:[%s1437_s29 + $0x6c] sm:$0xf] %vm949_vm3, %v912_v12  ;;  %vm736_vm2 = vcmp.ge.f32.partialorder %v641_v15, 0.0  ;;  %v800_v21 = vmul.f32 0.2, %v641_v15  ;;  %vm752_vm4 = vcmp.ge.f32.partialorder %v681_v16, 0.0 }
  0xf7   : > { %v816_v22 = vmul.f32 0.2, %v681_v16  ;;  %vm705_vm5 = vcmp.ge.f32.partialorder %v564_v19, 0.0  ;;  %v769_v23 = vmul.f32 0.2, %v564_v19  ;;  %vm721_vm6 = vcmp.ge.f32.partialorder %v604_v20, 0.0 }
  0xf8   : > { %v864_v24 = vsel %vm736_vm2, %v641_v15, %v800_v21  ;;  %v785_v25 = vmul.f32 0.2, %v604_v20 }
  0xf9   : > { %v928_v26 = vpack.c.bf16 %v864_v24, %v864_v24  ;;  %v880_v27 = vsel %vm752_vm4, %v681_v16, %v816_v22  ;;  %v833_v28 = vsel %vm705_vm5, %v564_v19, %v769_v23 }
  0xfa   : > { %v944_v29 = vpack.c.bf16 %v880_v27, %v880_v27  ;;  %v897_v30 = vpack.c.bf16 %v833_v28, %v833_v28  ;;  %v849_v31 = vsel %vm721_vm6, %v604_v20, %v785_v25 }
  0xfb   : > { %993 = vst.msk [vmem:[%s1437_s29 + $0xac] sm:$0xf] %vm949_vm3, %v928_v26  ;;  %v913_v32 = vpack.c.bf16 %v849_v31, %v849_v31  ;;  %v643_v33 = vpop.f32.mrf.mxu2  ;;  %v683_v34 = vpop.f32.mrf.mxu3 }
  0xfc   : > { %1009 = vst.msk [vmem:[%s1437_s29 + $0xec] sm:$0xf] %vm949_vm3, %v944_v29  ;;  %v644_v36 = vadd.f32 %v1428_v35, %v643_v33  ;;  %v684_v37 = vadd.f32 %v1428_v35, %v683_v34  ;;  %v565_v38 = vpop.f32.mrf.mxu0  ;;  %v605_v39 = vpop.f32.mrf.mxu1 }
  0xfd   : > { %962 = vst.msk [vmem:[%s1437_s29 + $0x30] sm:$0xf] %vm949_vm3, %v897_v30  ;;  %v566_v40 = vadd.f32 %v1428_v35, %v565_v38  ;;  %v606_v41 = vadd.f32 %v1428_v35, %v605_v39 }
  0xfe   : > { %978 = vst.msk [vmem:[%s1437_s29 + $0x70] sm:$0xf] %vm949_vm3, %v913_v32  ;;  %vm737_vm7 = vcmp.ge.f32.partialorder %v644_v36, 0.0  ;;  %v801_v42 = vmul.f32 0.2, %v644_v36  ;;  %vm753_vm8 = vcmp.ge.f32.partialorder %v684_v37, 0.0 }
  0xff   : > { %v817_v43 = vmul.f32 0.2, %v684_v37  ;;  %vm706_vm9 = vcmp.ge.f32.partialorder %v566_v40, 0.0  ;;  %v770_v44 = vmul.f32 0.2, %v566_v40  ;;  %vm722_vm10 = vcmp.ge.f32.partialorder %v606_v41, 0.0 }
 0x100   : > { %v865_v45 = vsel %vm737_vm7, %v644_v36, %v801_v42  ;;  %v786_v46 = vmul.f32 0.2, %v606_v41 }
 0x101   : > { %v929_v47 = vpack.c.bf16 %v865_v45, %v865_v45  ;;  %v881_v48 = vsel %vm753_vm8, %v684_v37, %v817_v43  ;;  %v834_v49 = vsel %vm706_vm9, %v566_v40, %v770_v44 }
 0x102   : > { %v945_v50 = vpack.c.bf16 %v881_v48, %v881_v48  ;;  %v898_v51 = vpack.c.bf16 %v834_v49, %v834_v49  ;;  %v850_v52 = vsel %vm722_vm10, %v606_v41, %v786_v46 }
 0x103   : > { %994 = vst.msk [vmem:[%s1437_s29 + $0xb0] sm:$0xf] %vm949_vm3, %v929_v47  ;;  %v914_v53 = vpack.c.bf16 %v850_v52, %v850_v52  ;;  %v645_v54 = vpop.f32.mrf.mxu2  ;;  %v685_v55 = vpop.f32.mrf.mxu3 }
 0x104   : > { %1010 = vst.msk [vmem:[%s1437_s29 + $0xf0] sm:$0xf] %vm949_vm3, %v945_v50  ;;  %v646_v56 = vadd.f32 %v1428_v35, %v645_v54  ;;  %v686_v57 = vadd.f32 %v1428_v35, %v685_v55  ;;  %v568_v58 = vpop.f32.mrf.mxu0  ;;  %v608_v59 = vpop.f32.mrf.mxu1 }
 0x105   : > { %963 = vst.msk [vmem:[%s1437_s29 + $0x34] sm:$0xf] %vm949_vm3, %v898_v51  ;;  %v569_v60 = vadd.f32 %v1428_v35, %v568_v58  ;;  %v609_v61 = vadd.f32 %v1428_v35, %v608_v59 }
 0x106   : > { %979 = vst.msk [vmem:[%s1437_s29 + $0x74] sm:$0xf] %vm949_vm3, %v914_v53  ;;  %vm738_vm11 = vcmp.ge.f32.partialorder %v646_v56, 0.0  ;;  %v802_v62 = vmul.f32 0.2, %v646_v56  ;;  %vm754_vm12 = vcmp.ge.f32.partialorder %v686_v57, 0.0 }
 0x107   : > { %v818_v63 = vmul.f32 0.2, %v686_v57  ;;  %vm707_vm13 = vcmp.ge.f32.partialorder %v569_v60, 0.0  ;;  %v771_v0 = vmul.f32 0.2, %v569_v60  ;;  %vm723_vm14 = vcmp.ge.f32.partialorder %v609_v61, 0.0 }
 0x108   : > { %v866_v1 = vsel %vm738_vm11, %v646_v56, %v802_v62  ;;  %v787_v2 = vmul.f32 0.2, %v609_v61 }
 0x109   : > { %v930_v3 = vpack.c.bf16 %v866_v1, %v866_v1  ;;  %v882_v4 = vsel %vm754_vm12, %v686_v57, %v818_v63  ;;  %v835_v5 = vsel %vm707_vm13, %v569_v60, %v771_v0 }
 0x10a   : > { %v946_v6 = vpack.c.bf16 %v882_v4, %v882_v4  ;;  %v899_v7 = vpack.c.bf16 %v835_v5, %v835_v5  ;;  %v851_v8 = vsel %vm723_vm14, %v609_v61, %v787_v2 }
 0x10b   : > { %995 = vst.msk [vmem:[%s1437_s29 + $0xb4] sm:$0xf] %vm949_vm3, %v930_v3  ;;  %v915_v9 = vpack.c.bf16 %v851_v8, %v851_v8  ;;  %v648_v10 = vpop.f32.mrf.mxu2  ;;  %v688_v11 = vpop.f32.mrf.mxu3 }
 0x10c   : > { %1011 = vst.msk [vmem:[%s1437_s29 + $0xf4] sm:$0xf] %vm949_vm3, %v946_v6  ;;  %v649_v12 = vadd.f32 %v1428_v35, %v648_v10  ;;  %v689_v13 = vadd.f32 %v1428_v35, %v688_v11  ;;  %v570_v14 = vpop.f32.mrf.mxu0  ;;  %v610_v15 = vpop.f32.mrf.mxu1 }
 0x10d   : > { %964 = vst.msk [vmem:[%s1437_s29 + $0x38] sm:$0xf] %vm949_vm3, %v899_v7  ;;  %v571_v16 = vadd.f32 %v1428_v35, %v570_v14  ;;  %v611_v17 = vadd.f32 %v1428_v35, %v610_v15 }
 0x10e   : > { %980 = vst.msk [vmem:[%s1437_s29 + $0x78] sm:$0xf] %vm949_vm3, %v915_v9  ;;  %vm739_vm15 = vcmp.ge.f32.partialorder %v649_v12, 0.0  ;;  %v803_v18 = vmul.f32 0.2, %v649_v12  ;;  %vm755_vm0 = vcmp.ge.f32.partialorder %v689_v13, 0.0 }
 0x10f   : > { %v819_v19 = vmul.f32 0.2, %v689_v13  ;;  %vm708_vm1 = vcmp.ge.f32.partialorder %v571_v16, 0.0  ;;  %v772_v20 = vmul.f32 0.2, %v571_v16  ;;  %vm724_vm2 = vcmp.ge.f32.partialorder %v611_v17, 0.0 }
 0x110   : > { %v867_v21 = vsel %vm739_vm15, %v649_v12, %v803_v18  ;;  %v788_v22 = vmul.f32 0.2, %v611_v17 }
 0x111   : > { %v931_v23 = vpack.c.bf16 %v867_v21, %v867_v21  ;;  %v883_v24 = vsel %vm755_vm0, %v689_v13, %v819_v19  ;;  %v836_v25 = vsel %vm708_vm1, %v571_v16, %v772_v20 }
 0x112   : > { %v947_v26 = vpack.c.bf16 %v883_v24, %v883_v24  ;;  %v900_v27 = vpack.c.bf16 %v836_v25, %v836_v25  ;;  %v852_v28 = vsel %vm724_vm2, %v611_v17, %v788_v22 }
 0x113   : > { %996 = vst.msk [vmem:[%s1437_s29 + $0xb8] sm:$0xf] %vm949_vm3, %v931_v23  ;;  %v916_v29 = vpack.c.bf16 %v852_v28, %v852_v28  ;;  %v650_v30 = vpop.f32.mrf.mxu2  ;;  %v690_v31 = vpop.f32.mrf.mxu3 }
 0x114   : > { %1012 = vst.msk [vmem:[%s1437_s29 + $0xf8] sm:$0xf] %vm949_vm3, %v947_v26  ;;  %v651_v32 = vadd.f32 %v1428_v35, %v650_v30  ;;  %v691_v33 = vadd.f32 %v1428_v35, %v690_v31 }
 0x115   : > { %965 = vst.msk [vmem:[%s1437_s29 + $0x3c] sm:$0xf] %vm949_vm3, %v900_v27 }
 0x116   : > { %981 = vst.msk [vmem:[%s1437_s29 + $0x7c] sm:$0xf] %vm949_vm3, %v916_v29  ;;  %vm740_vm4 = vcmp.ge.f32.partialorder %v651_v32, 0.0  ;;  %v804_v34 = vmul.f32 0.2, %v651_v32  ;;  %vm756_vm5 = vcmp.ge.f32.partialorder %v691_v33, 0.0 }
 0x117   : > { %v820_v36 = vmul.f32 0.2, %v691_v33 }
 0x118   : > { %v868_v37 = vsel %vm740_vm4, %v651_v32, %v804_v34 }
 0x119   : > { %v932_v38 = vpack.c.bf16 %v868_v37, %v868_v37  ;;  %v884_v39 = vsel %vm756_vm5, %v691_v33, %v820_v36 }
 0x11a   : > { %v948_v40 = vpack.c.bf16 %v884_v39, %v884_v39 }
 0x11b   : > { %997 = vst.msk [vmem:[%s1437_s29 + $0xbc] sm:$0xf] %vm949_vm3, %v932_v38 }
 0x11c   : > { %1013 = vst.msk [vmem:[%s1437_s29 + $0xfc] sm:$0xf] %vm949_vm3, %v948_v40 }
 0x11d PF: > { %s13_s12 = sadd.s32 1, %s1312_s12  }
 0x11e   : > { %p10_p4 = scmp.ge.s32.totalorder %s13_s12, 6  }
 0x120   :  { %12 = sbr.rel (!%p10_p4) target bundleno = 1 (0x1), region = 62 }

// kernel: discriminator_forward.5
= control target key start
LH: loop header
LB: loop body
LE: loop exit
PB: predicated region body
PF: predicated region fallthrough
CT: control target
= control target key end

     0   :  { %s868_s12 = smov 0   ;;  %s1037_s0 = inlined_call_operand.vmem [shape: bf16[512,128], index: 0, kind: input, shape index: {}]   ;;  %s1038_s1 = inlined_call_operand.vmem [shape: bf16[128,16], index: 1, kind: input, shape index: {}]   ;;  %s1039_s2 = inlined_call_operand.vmem [shape: f32[1,16], index: 2, kind: input, shape index: {}]   ;;  %s1040_s3 = inlined_call_operand.vmem [shape: bf16[512,16], index: 3, kind: output, shape index: {}]  }
   0x1 LB: > { %s676_s13 = sadd.s32 4294967295, %s846_s12   ;;  %p680_p0 = scmp.ge.s32.totalorder %s846_s12, 1  ;;  %s846_s12 = sphi %s868_s12, %s13_s12  }
   0x2   : > { %p138_p1 = scmp.lt.s32.totalorder %s846_s12, 3 }
   0x4   : > { %p139_p2 = pnand %p680_p0, %p138_p1 }
   0x5   : > { %s681_s22 = sshll.u32 (!%p139_p2), %s676_s13, 5 }
   0x6   : > { %142 = sbr.rel (%p139_p2) target bundleno = 241 (0xf1), region = 32  ;;  %p163_p3 = scmp.lt.s32.totalorder (!%p139_p2), %s681_s22, 63 }
   0xb   : > { %v806_v0 = vld [vmem:[%s1038_s1 + $0x38] sm:$0xff]  ;;  %v805_v1 = vld [vmem:[%s1038_s1 + $0x30] sm:$0xff]  ;;  %v804_v2 = vld [vmem:[%s1038_s1 + $0x28] sm:$0xff]  ;;  %s1042_s22 = smov (!%p163_p3, %s681_s22), 63  ;;  %vm587_vm2 = vcmask 125952  }
   0xc   : > { %370 = vmatpush.bf16.msra.mxu0 %v806_v0  ;;  %807 = vmatpush.bf16.msra.mxu1 %v806_v0  ;;  %v803_v3 = vld [vmem:[%s1038_s1 + $0x20] sm:$0xff]  ;;  %v802_v4 = vld [vmem:[%s1038_s1 + $0x18] sm:$0xff]  ;;  %v801_v5 = vld [vmem:[%s1038_s1 + $0x10] sm:$0xff]  ;;  %s682_s29 = sshll.u32 %s1042_s22, 2 }
   0xd   : > { %808 = vmatpush.bf16.msra.mxu2 %v806_v0  ;;  %809 = vmatpush.bf16.msra.mxu3 %v806_v0  ;;  %v800_v6 = vld [vmem:[%s1038_s1 + $0x8] sm:$0xff]  ;;  %v799_v7 = vld [vmem:[%s1038_s1] sm:$0xff]  ;;  %s908_s7 = scalar_lea.vmem %s1037_s0, %s682_s29  ;;  %s938_s13 = scalar_lea.vmem %s1040_s3, %s682_s29 }
   0xe   : > { %v783_v8 = vld [vmem:[%s908_s7] sm:$0xff]  ;;  %v784_v12 = vld [vmem:[%s908_s7 + $0x8] sm:$0xff]  ;;  %v785_v16 = vld [vmem:[%s908_s7 + $0x10] sm:$0xff] }
   0xf   : > { %v787_v9 = vld [vmem:[%s908_s7 + $0x20] sm:$0xff]  ;;  %v788_v13 = vld [vmem:[%s908_s7 + $0x28] sm:$0xff]  ;;  %v789_v17 = vld [vmem:[%s908_s7 + $0x30] sm:$0xff] }
  0x10   : > { %371 = vmatpush.bf16.msra.mxu0 %v805_v1  ;;  %810 = vmatpush.bf16.msra.mxu1 %v805_v1  ;;  %v791_v10 = vld [vmem:[%s908_s7 + $0x40] sm:$0xff]  ;;  %v792_v14 = vld [vmem:[%s908_s7 + $0x48] sm:$0xff]  ;;  %v793_v18 = vld [vmem:[%s908_s7 + $0x50] sm:$0xff] }
  0x11   : > { %811 = vmatpush.bf16.msra.mxu2 %v805_v1  ;;  %812 = vmatpush.bf16.msra.mxu3 %v805_v1  ;;  %v795_v11 = vld [vmem:[%s908_s7 + $0x60] sm:$0xff]  ;;  %v796_v15 = vld [vmem:[%s908_s7 + $0x68] sm:$0xff]  ;;  %v797_v19 = vld [vmem:[%s908_s7 + $0x70] sm:$0xff] }
  0x12   : > { %v786_v20 = vld [vmem:[%s908_s7 + $0x18] sm:$0xff]  ;;  %v929_v24 = vld [vmem:[%s1039_s2] ss:$0 sm:$0xff] }
  0x13   : > { %v790_v21 = vld [vmem:[%s908_s7 + $0x38] sm:$0xff] }
  0x14   : > { %372 = vmatpush.bf16.msra.mxu0 %v804_v2  ;;  %813 = vmatpush.bf16.msra.mxu1 %v804_v2  ;;  %v794_v22 = vld [vmem:[%s908_s7 + $0x58] sm:$0xff] }
  0x15   : > { %814 = vmatpush.bf16.msra.mxu2 %v804_v2  ;;  %815 = vmatpush.bf16.msra.mxu3 %v804_v2  ;;  %v798_v23 = vld [vmem:[%s908_s7 + $0x78] sm:$0xff] }
  0x18   : > { %373 = vmatpush.bf16.msra.mxu0 %v803_v3  ;;  %816 = vmatpush.bf16.msra.mxu1 %v803_v3 }
  0x19   : > { %817 = vmatpush.bf16.msra.mxu2 %v803_v3  ;;  %818 = vmatpush.bf16.msra.mxu3 %v803_v3 }
  0x1c   : > { %374 = vmatpush.bf16.msra.mxu0 %v802_v4  ;;  %819 = vmatpush.bf16.msra.mxu1 %v802_v4 }
  0x1d   : > { %820 = vmatpush.bf16.msra.mxu2 %v802_v4  ;;  %821 = vmatpush.bf16.msra.mxu3 %v802_v4 }
  0x20   : > { %375 = vmatpush.bf16.msra.mxu0 %v801_v5  ;;  %822 = vmatpush.bf16.msra.mxu1 %v801_v5 }
  0x21   : > { %823 = vmatpush.bf16.msra.mxu2 %v801_v5  ;;  %824 = vmatpush.bf16.msra.mxu3 %v801_v5 }
  0x24   : > { %376 = vmatpush.bf16.msra.mxu0 %v800_v6  ;;  %825 = vmatpush.bf16.msra.mxu1 %v800_v6 }
  0x25   : > { %826 = vmatpush.bf16.msra.mxu2 %v800_v6  ;;  %827 = vmatpush.bf16.msra.mxu3 %v800_v6 }
  0x28   : > { %377 = vmatpush.bf16.msra.mxu0 %v799_v7  ;;  %828 = vmatpush.bf16.msra.mxu1 %v799_v7 }
  0x29   : > { %829 = vmatpush.bf16.msra.mxu2 %v799_v7  ;;  %830 = vmatpush.bf16.msra.mxu3 %v799_v7 }
  0x2b   : > { %378 = vmatmul.bf16.vlgmr.msra.gmra.mxu0 %v783_v8  ;;  %398 = vmatmul.bf16.vlgmr.msra.gmra.mxu1 %v787_v9 }
  0x2c   : > { %418 = vmatmul.bf16.vlgmr.msra.gmra.mxu2 %v791_v10  ;;  %438 = vmatmul.bf16.vlgmr.msra.gmra.mxu3 %v795_v11 }
  0x3b   : > { %383 = vmatmul.bf16.gmra.mxu0 %v784_v12  ;;  %403 = vmatmul.bf16.gmra.mxu1 %v788_v13 }
  0x3c   : > { %423 = vmatmul.bf16.gmra.mxu2 %v792_v14  ;;  %443 = vmatmul.bf16.gmra.mxu3 %v796_v15 }
  0x4b   : > { %388 = vmatmul.bf16.gmra.mxu0 %v785_v16  ;;  %408 = vmatmul.bf16.gmra.mxu1 %v789_v17 }
  0x4c   : > { %428 = vmatmul.bf16.gmra.mxu2 %v793_v18  ;;  %448 = vmatmul.bf16.gmra.mxu3 %v797_v19 }
  0x5b   : > { %393 = vmatmul.bf16.gmra.mxu0 %v786_v20  ;;  %413 = vmatmul.bf16.gmra.mxu1 %v790_v21 }
  0x5c   : > { %433 = vmatmul.bf16.gmra.mxu2 %v794_v22  ;;  %453 = vmatmul.bf16.gmra.mxu3 %v798_v23 }
  0xa8   : > { %v379_v25 = vpop.f32.mrf.mxu0  ;;  %v399_v26 = vpop.f32.mrf.mxu1 }
  0xa9   : > { %v380_v27 = vadd.f32 %v929_v24, %v379_v25  ;;  %v400_v28 = vadd.f32 %v929_v24, %v399_v26 }
  0xab   : > { %vm459_vm0 = vcmp.ge.f32.partialorder %v380_v27, 0.0  ;;  %v491_v29 = vmul.f32 0.2, %v380_v27  ;;  %vm467_vm1 = vcmp.ge.f32.partialorder %v400_v28, 0.0  ;;  %v499_v30 = vmul.f32 0.2, %v400_v28 }
  0xad   : > { %v523_v31 = vsel %vm459_vm0, %v380_v27, %v491_v29  ;;  %v531_v32 = vsel %vm467_vm1, %v400_v28, %v499_v30 }
  0xae   : > { %v555_v33 = vpack.c.bf16 %v523_v31, %v523_v31  ;;  %v563_v34 = vpack.c.bf16 %v531_v32, %v531_v32 }
  0xaf   : > { %v419_v35 = vpop.f32.mrf.mxu2  ;;  %v439_v36 = vpop.f32.mrf.mxu3 }
  0xb0   : > { %588 = vst.msk [vmem:[%s938_s13] sm:$0xf] %vm587_vm2, %v555_v33  ;;  %v420_v37 = vadd.f32 %v929_v24, %v419_v35  ;;  %v440_v38 = vadd.f32 %v929_v24, %v439_v36  ;;  %v381_v39 = vpop.f32.mrf.mxu0  ;;  %v401_v40 = vpop.f32.mrf.mxu1 }
  0xb1   : > { %596 = vst.msk [vmem:[%s938_s13 + $0x20] sm:$0xf] %vm587_vm2, %v563_v34  ;;  %v382_v41 = vadd.f32 %v929_v24, %v381_v39  ;;  %v402_v42 = vadd.f32 %v929_v24, %v401_v40 }
  0xb2   : > { %vm475_vm3 = vcmp.ge.f32.partialorder %v420_v37, 0.0  ;;  %v507_v43 = vmul.f32 0.2, %v420_v37  ;;  %vm483_vm4 = vcmp.ge.f32.partialorder %v440_v38, 0.0  ;;  %v515_v44 = vmul.f32 0.2, %v440_v38 }
  0xb3   : > { %vm460_vm5 = vcmp.ge.f32.partialorder %v382_v41, 0.0  ;;  %v492_v45 = vmul.f32 0.2, %v382_v41  ;;  %vm468_vm6 = vcmp.ge.f32.partialorder %v402_v42, 0.0  ;;  %v500_v46 = vmul.f32 0.2, %v402_v42 }
  0xb4   : > { %v539_v47 = vsel %vm475_vm3, %v420_v37, %v507_v43  ;;  %v547_v48 = vsel %vm483_vm4, %v440_v38, %v515_v44 }
  0xb5   : > { %v571_v49 = vpack.c.bf16 %v539_v47, %v539_v47  ;;  %v579_v50 = vpack.c.bf16 %v547_v48, %v547_v48  ;;  %v524_v51 = vsel %vm460_vm5, %v382_v41, %v492_v45  ;;  %v532_v52 = vsel %vm468_vm6, %v402_v42, %v500_v46 }
  0xb6   : > { %v556_v53 = vpack.c.bf16 %v524_v51, %v524_v51  ;;  %v564_v54 = vpack.c.bf16 %v532_v52, %v532_v52 }
  0xb7   : > { %604 = vst.msk [vmem:[%s938_s13 + $0x40] sm:$0xf] %vm587_vm2, %v571_v49  ;;  %v421_v55 = vpop.f32.mrf.mxu2  ;;  %v441_v56 = vpop.f32.mrf.mxu3 }
  0xb8   : > { %612 = vst.msk [vmem:[%s938_s13 + $0x60] sm:$0xf] %vm587_vm2, %v579_v50  ;;  %v422_v57 = vadd.f32 %v929_v24, %v421_v55  ;;  %v442_v58 = vadd.f32 %v929_v24, %v441_v56  ;;  %v384_v59 = vpop.f32.mrf.mxu0  ;;  %v404_v60 = vpop.f32.mrf.mxu1 }
  0xb9   : > { %589 = vst.msk [vmem:[%s938_s13 + $0x4] sm:$0xf] %vm587_vm2, %v556_v53  ;;  %v385_v61 = vadd.f32 %v929_v24, %v384_v59  ;;  %v405_v62 = vadd.f32 %v929_v24, %v404_v60 }
  0xba   : > { %597 = vst.msk [vmem:[%s938_s13 + $0x24] sm:$0xf] %vm587_vm2, %v564_v54  ;;  %vm476_vm7 = vcmp.ge.f32.partialorder %v422_v57, 0.0  ;;  %v508_v63 = vmul.f32 0.2, %v422_v57  ;;  %vm484_vm8 = vcmp.ge.f32.partialorder %v442_v58, 0.0 }
  0xbb   : > { %v516_v0 = vmul.f32 0.2, %v442_v58  ;;  %vm461_vm9 = vcmp.ge.f32.partialorder %v385_v61, 0.0  ;;  %v493_v1 = vmul.f32 0.2, %v385_v61  ;;  %vm469_vm10 = vcmp.ge.f32.partialorder %v405_v62, 0.0 }
  0xbc   : > { %v540_v2 = vsel %vm476_vm7, %v422_v57, %v508_v63  ;;  %v501_v3 = vmul.f32 0.2, %v405_v62 }
  0xbd   : > { %v572_v4 = vpack.c.bf16 %v540_v2, %v540_v2  ;;  %v548_v5 = vsel %vm484_vm8, %v442_v58, %v516_v0  ;;  %v525_v6 = vsel %vm461_vm9, %v385_v61, %v493_v1 }
  0xbe   : > { %v580_v7 = vpack.c.bf16 %v548_v5, %v548_v5  ;;  %v557_v8 = vpack.c.bf16 %v525_v6, %v525_v6  ;;  %v533_v9 = vsel %vm469_vm10, %v405_v62, %v501_v3 }
  0xbf   : > { %605 = vst.msk [vmem:[%s938_s13 + $0x44] sm:$0xf] %vm587_vm2, %v572_v4  ;;  %v565_v10 = vpack.c.bf16 %v533_v9, %v533_v9  ;;  %v424_v11 = vpop.f32.mrf.mxu2  ;;  %v444_v12 = vpop.f32.mrf.mxu3 }
  0xc0   : > { %613 = vst.msk [vmem:[%s938_s13 + $0x64] sm:$0xf] %vm587_vm2, %v580_v7  ;;  %v425_v13 = vadd.f32 %v929_v24, %v424_v11  ;;  %v445_v14 = vadd.f32 %v929_v24, %v444_v12  ;;  %v386_v15 = vpop.f32.mrf.mxu0  ;;  %v406_v16 = vpop.f32.mrf.mxu1 }
  0xc1   : > { %590 = vst.msk [vmem:[%s938_s13 + $0x8] sm:$0xf] %vm587_vm2, %v557_v8  ;;  %v387_v17 = vadd.f32 %v929_v24, %v386_v15  ;;  %v407_v18 = vadd.f32 %v929_v24, %v406_v16 }
  0xc2   : > { %598 = vst.msk [vmem:[%s938_s13 + $0x28] sm:$0xf] %vm587_vm2, %v565_v10  ;;  %vm477_vm11 = vcmp.ge.f32.partialorder %v425_v13, 0.0  ;;  %v509_v19 = vmul.f32 0.2, %v425_v13  ;;  %vm485_vm12 = vcmp.ge.f32.partialorder %v445_v14, 0.0 }
  0xc3   : > { %v517_v20 = vmul.f32 0.2, %v445_v14  ;;  %vm462_vm13 = vcmp.ge.f32.partialorder %v387_v17, 0.0  ;;  %v494_v21 = vmul.f32 0.2, %v387_v17  ;;  %vm470_vm14 = vcmp.ge.f32.partialorder %v407_v18, 0.0 }
  0xc4   : > { %v541_v22 = vsel %vm477_vm11, %v425_v13, %v509_v19  ;;  %v502_v23 = vmul.f32 0.2, %v407_v18 }
  0xc5   : > { %v573_v25 = vpack.c.bf16 %v541_v22, %v541_v22  ;;  %v549_v26 = vsel %vm485_vm12, %v445_v14, %v517_v20  ;;  %v526_v27 = vsel %vm462_vm13, %v387_v17, %v494_v21 }
  0xc6   : > { %v581_v28 = vpack.c.bf16 %v549_v26, %v549_v26  ;;  %v558_v29 = vpack.c.bf16 %v526_v27, %v526_v27  ;;  %v534_v30 = vsel %vm470_vm14, %v407_v18, %v502_v23 }
  0xc7   : > { %606 = vst.msk [vmem:[%s938_s13 + $0x48] sm:$0xf] %vm587_vm2, %v573_v25  ;;  %v566_v31 = vpack.c.bf16 %v534_v30, %v534_v30  ;;  %v426_v32 = vpop.f32.mrf.mxu2  ;;  %v446_v33 = vpop.f32.mrf.mxu3 }
  0xc8   : > { %614 = vst.msk [vmem:[%s938_s13 + $0x68] sm:$0xf] %vm587_vm2, %v581_v28  ;;  %v427_v34 = vadd.f32 %v929_v24, %v426_v32  ;;  %v447_v35 = vadd.f32 %v929_v24, %v446_v33  ;;  %v389_v36 = vpop.f32.mrf.mxu0  ;;  %v409_v37 = vpop.f32.mrf.mxu1 }
  0xc9   : > { %591 = vst.msk [vmem:[%s938_s13 + $0xc] sm:$0xf] %vm587_vm2, %v558_v29  ;;  %v390_v38 = vadd.f32 %v929_v24, %v389_v36  ;;  %v410_v39 = vadd.f32 %v929_v24, %v409_v37 }
  0xca   : > { %599 = vst.msk [vmem:[%s938_s13 + $0x2c] sm:$0xf] %vm587_vm2, %v566_v31  ;;  %vm478_vm15 = vcmp.ge.f32.partialorder %v427_v34, 0.0  ;;  %v510_v40 = vmul.f32 0.2, %v427_v34  ;;  %vm486_vm0 = vcmp.ge.f32.partialorder %v447_v35, 0.0 }
  0xcb   : > { %v518_v41 = vmul.f32 0.2, %v447_v35  ;;  %vm463_vm1 = vcmp.ge.f32.partialorder %v390_v38, 0.0  ;;  %v495_v42 = vmul.f32 0.2, %v390_v38  ;;  %vm471_vm3 = vcmp.ge.f32.partialorder %v410_v39, 0.0 }
  0xcc   : > { %v542_v43 = vsel %vm478_vm15, %v427_v34, %v510_v40  ;;  %v503_v44 = vmul.f32 0.2, %v410_v39 }
  0xcd   : > { %v574_v45 = vpack.c.bf16 %v542_v43, %v542_v43  ;;  %v550_v46 = vsel %vm486_vm0, %v447_v35, %v518_v41  ;;  %v527_v47 = vsel %vm463_vm1, %v390_v38, %v495_v42 }
  0xce   : > { %v582_v48 = vpack.c.bf16 %v550_v46, %v550_v46  ;;  %v559_v49 = vpack.c.bf16 %v527_v47, %v527_v47  ;;  %v535_v50 = vsel %vm471_vm3, %v410_v39, %v503_v44 }
  0xcf   : > { %607 = vst.msk [vmem:[%s938_s13 + $0x4c] sm:$0xf] %vm587_vm2, %v574_v45  ;;  %v567_v51 = vpack.c.bf16 %v535_v50, %v535_v50  ;;  %v429_v52 = vpop.f32.mrf.mxu2  ;;  %v449_v53 = vpop.f32.mrf.mxu3 }
  0xd0   : > { %615 = vst.msk [vmem:[%s938_s13 + $0x6c] sm:$0xf] %vm587_vm2, %v582_v48  ;;  %v430_v54 = vadd.f32 %v929_v24, %v429_v52  ;;  %v450_v55 = vadd.f32 %v929_v24, %v449_v53  ;;  %v391_v56 = vpop.f32.mrf.mxu0  ;;  %v411_v57 = vpop.f32.mrf.mxu1 }
  0xd1   : > { %592 = vst.msk [vmem:[%s938_s13 + $0x10] sm:$0xf] %vm587_vm2, %v559_v49  ;;  %v392_v58 = vadd.f32 %v929_v24, %v391_v56  ;;  %v412_v59 = vadd.f32 %v929_v24, %v411_v57 }
  0xd2   : > { %600 = vst.msk [vmem:[%s938_s13 + $0x30] sm:$0xf] %vm587_vm2, %v567_v51  ;;  %vm479_vm4 = vcmp.ge.f32.partialorder %v430_v54, 0.0  ;;  %v511_v60 = vmul.f32 0.2, %v430_v54  ;;  %vm487_vm5 = vcmp.ge.f32.partialorder %v450_v55, 0.0 }
  0xd3   : > { %v519_v61 = vmul.f32 0.2, %v450_v55  ;;  %vm464_vm6 = vcmp.ge.f32.partialorder %v392_v58, 0.0  ;;  %v496_v62 = vmul.f32 0.2, %v392_v58  ;;  %vm472_vm7 = vcmp.ge.f32.partialorder %v412_v59, 0.0 }
  0xd4   : > { %v543_v63 = vsel %vm479_vm4, %v430_v54, %v511_v60  ;;  %v504_v0 = vmul.f32 0.2, %v412_v59 }
  0xd5   : > { %v575_v1 = vpack.c.bf16 %v543_v63, %v543_v63  ;;  %v551_v2 = vsel %vm487_vm5, %v450_v55, %v519_v61  ;;  %v528_v3 = vsel %vm464_vm6, %v392_v58, %v496_v62 }
  0xd6   : > { %v583_v4 = vpack.c.bf16 %v551_v2, %v551_v2  ;;  %v560_v5 = vpack.c.bf16 %v528_v3, %v528_v3  ;;  %v536_v6 = vsel %vm472_vm7, %v412_v59, %v504_v0 }
  0xd7   : > { %608 = vst.msk [vmem:[%s938_s13 + $0x50] sm:$0xf] %vm587_vm2, %v575_v1  ;;  %v568_v7 = vpack.c.bf16 %v536_v6, %v536_v6  ;;  %v431_v8 = vpop.f32.mrf.mxu2  ;;  %v451_v9 = vpop.f32.mrf.mxu3 }
  0xd8   : > { %616 = vst.msk [vmem:[%s938_s13 + $0x70] sm:$0xf] %vm587_vm2, %v583_v4  ;;  %v432_v10 = vadd.f32 %v929_v24, %v431_v8  ;;  %v452_v11 = vadd.f32 %v929_v24, %v451_v9  ;;  %v394_v12 = vpop.f32.mrf.mxu0  ;;  %v414_v13 = vpop.f32.mrf.mxu1 }
  0xd9   : > { %593 = vst.msk [vmem:[%s938_s13 + $0x14] sm:$0xf] %vm587_vm2, %v560_v5  ;;  %v395_v14 = vadd.f32 %v929_v24, %v394_v12  ;;  %v415_v15 = vadd.f32 %v929_v24, %v414_v13 }
  0xda   : > { %601 = vst.msk [vmem:[%s938_s13 + $0x34] sm:$0xf] %vm587_vm2, %v568_v7  ;;  %vm480_vm8 = vcmp.ge.f32.partialorder %v432_v10, 0.0  ;;  %v512_v16 = vmul.f32 0.2, %v432_v10  ;;  %vm488_vm9 = vcmp.ge.f32.partialorder %v452_v11, 0.0 }
  0xdb   : > { %v520_v17 = vmul.f32 0.2, %v452_v11  ;;  %vm465_vm10 = vcmp.ge.f32.partialorder %v395_v14, 0.0  ;;  %v497_v18 = vmul.f32 0.2, %v395_v14  ;;  %vm473_vm11 = vcmp.ge.f32.partialorder %v415_v15, 0.0 }
  0xdc   : > { %v544_v19 = vsel %vm480_vm8, %v432_v10, %v512_v16  ;;  %v505_v20 = vmul.f32 0.2, %v415_v15 }
  0xdd   : > { %v576_v21 = vpack.c.bf16 %v544_v19, %v544_v19  ;;  %v552_v22 = vsel %vm488_vm9, %v452_v11, %v520_v17  ;;  %v529_v23 = vsel %vm465_vm10, %v395_v14, %v497_v18 }
  0xde   : > { %v584_v25 = vpack.c.bf16 %v552_v22, %v552_v22  ;;  %v561_v26 = vpack.c.bf16 %v529_v23, %v529_v23  ;;  %v537_v27 = vsel %vm473_vm11, %v415_v15, %v505_v20 }
  0xdf   : > { %609 = vst.msk [vmem:[%s938_s13 + $0x54] sm:$0xf] %vm587_vm2, %v576_v21  ;;  %v569_v28 = vpack.c.bf16 %v537_v27, %v537_v27  ;;  %v434_v29 = vpop.f32.mrf.mxu2  ;;  %v454_v30 = vpop.f32.mrf.mxu3 }
  0xe0   : > { %617 = vst.msk [vmem:[%s938_s13 + $0x74] sm:$0xf] %vm587_vm2, %v584_v25  ;;  %v435_v31 = vadd.f32 %v929_v24, %v434_v29  ;;  %v455_v32 = vadd.f32 %v929_v24, %v454_v30  ;;  %v396_v33 = vpop.f32.mrf.mxu0  ;;  %v416_v34 = vpop.f32.mrf.mxu1 }
  0xe1   : > { %594 = vst.msk [vmem:[%s938_s13 + $0x18] sm:$0xf] %vm587_vm2, %v561_v26  ;;  %v397_v35 = vadd.f32 %v929_v24, %v396_v33  ;;  %v417_v36 = vadd.f32 %v929_v24, %v416_v34 }
  0xe2   : > { %602 = vst.msk [vmem:[%s938_s13 + $0x38] sm:$0xf] %vm587_vm2, %v569_v28  ;;  %vm481_vm12 = vcmp.ge.f32.partialorder %v435_v31, 0.0  ;;  %v513_v37 = vmul.f32 0.2, %v435_v31  ;;  %vm489_vm13 = vcmp.ge.f32.partialorder %v455_v32, 0.0 }
  0xe3   : > { %v521_v38 = vmul.f32 0.2, %v455_v32  ;;  %vm466_vm14 = vcmp.ge.f32.partialorder %v397_v35, 0.0  ;;  %v498_v39 = vmul.f32 0.2, %v397_v35  ;;  %vm474_vm15 = vcmp.ge.f32.partialorder %v417_v36, 0.0 }
  0xe4   : > { %v545_v40 = vsel %vm481_vm12, %v435_v31, %v513_v37  ;;  %v506_v41 = vmul.f32 0.2, %v417_v36 }
  0xe5   : > { %v577_v42 = vpack.c.bf16 %v545_v40, %v545_v40  ;;  %v553_v43 = vsel %vm489_vm13, %v455_v32, %v521_v38  ;;  %v530_v44 = vsel %vm466_vm14, %v397_v35, %v498_v39 }
  0xe6   : > { %v585_v45 = vpack.c.bf16 %v553_v43, %v553_v43  ;;  %v562_v46 = vpack.c.bf16 %v530_v44, %v530_v44  ;;  %v538_v47 = vsel %vm474_vm15, %v417_v36, %v506_v41 }
  0xe7   : > { %610 = vst.msk [vmem:[%s938_s13 + $0x58] sm:$0xf] %vm587_vm2, %v577_v42  ;;  %v570_v48 = vpack.c.bf16 %v538_v47, %v538_v47  ;;  %v436_v49 = vpop.f32.mrf.mxu2  ;;  %v456_v50 = vpop.f32.mrf.mxu3 }
  0xe8   : > { %618 = vst.msk [vmem:[%s938_s13 + $0x78] sm:$0xf] %vm587_vm2, %v585_v45  ;;  %v437_v51 = vadd.f32 %v929_v24, %v436_v49  ;;  %v457_v52 = vadd.f32 %v929_v24, %v456_v50 }
  0xe9   : > { %595 = vst.msk [vmem:[%s938_s13 + $0x1c] sm:$0xf] %vm587_vm2, %v562_v46 }
  0xea   : > { %603 = vst.msk [vmem:[%s938_s13 + $0x3c] sm:$0xf] %vm587_vm2, %v570_v48  ;;  %vm482_vm0 = vcmp.ge.f32.partialorder %v437_v51, 0.0  ;;  %v514_v53 = vmul.f32 0.2, %v437_v51  ;;  %vm490_vm1 = vcmp.ge.f32.partialorder %v457_v52, 0.0 }
  0xeb   : > { %v522_v54 = vmul.f32 0.2, %v457_v52 }
  0xec   : > { %v546_v55 = vsel %vm482_vm0, %v437_v51, %v514_v53 }
  0xed   : > { %v578_v56 = vpack.c.bf16 %v546_v55, %v546_v55  ;;  %v554_v57 = vsel %vm490_vm1, %v457_v52, %v522_v54 }
  0xee   : > { %v586_v58 = vpack.c.bf16 %v554_v57, %v554_v57 }
  0xef   : > { %611 = vst.msk [vmem:[%s938_s13 + $0x5c] sm:$0xf] %vm587_vm2, %v578_v56 }
  0xf0   : > { %619 = vst.msk [vmem:[%s938_s13 + $0x7c] sm:$0xf] %vm587_vm2, %v586_v58 }
  0xf1 PF: > { %s13_s12 = sadd.s32 1, %s846_s12  }
  0xf2   : > { %p10_p4 = scmp.ge.s32.totalorder %s13_s12, 4  }
  0xf4   :  { %12 = sbr.rel (!%p10_p4) target bundleno = 1 (0x1), region = 62 }

// kernel: discriminator_forward.6
= control target key start
LH: loop header
LB: loop body
LE: loop exit
PB: predicated region body
PF: predicated region fallthrough
CT: control target
= control target key end

     0   :  { %vm404_vm1 = vcmask 257024   ;;  %s851_s1 = inlined_call_operand.vmem [shape: bf16[256,32], index: 1, kind: input, shape index: {}]   ;;  %s852_s2 = inlined_call_operand.vmem [shape: f32[1,32], index: 2, kind: input, shape index: {}]   ;;  %s853_s0 = inlined_call_operand.vmem [shape: bf16[128,256], index: 0, kind: input, shape index: {}]   ;;  %s854_s3 = inlined_call_operand.vmem [shape: bf16[128,32], index: 3, kind: output, shape index: {}]  }
   0x1   :  { %v576_v0 = vld [vmem:[%s851_s1 + $0x38] sm:$0xff]  ;;  %v575_v2 = vld [vmem:[%s851_s1 + $0x30] sm:$0xff]  ;;  %v574_v4 = vld [vmem:[%s851_s1 + $0x28] sm:$0xff] }
   0x2   :  { %v584_v1 = vld [vmem:[%s851_s1 + $0x78] sm:$0xff]  ;;  %242 = vmatpush.bf16.msra.mxu0 %v576_v0  ;;  %585 = vmatpush.bf16.msra.mxu2 %v576_v0  ;;  %v583_v3 = vld [vmem:[%s851_s1 + $0x70] sm:$0xff]  ;;  %v582_v5 = vld [vmem:[%s851_s1 + $0x68] sm:$0xff] }
   0x3   :  { %291 = vmatpush.bf16.msra.mxu1 %v584_v1  ;;  %593 = vmatpush.bf16.msra.mxu3 %v584_v1  ;;  %v573_v6 = vld [vmem:[%s851_s1 + $0x20] sm:$0xff]  ;;  %v572_v8 = vld [vmem:[%s851_s1 + $0x18] sm:$0xff]  ;;  %v571_v10 = vld [vmem:[%s851_s1 + $0x10] sm:$0xff] }
   0x4   :  { %v581_v7 = vld [vmem:[%s851_s1 + $0x60] sm:$0xff]  ;;  %v580_v9 = vld [vmem:[%s851_s1 + $0x58] sm:$0xff]  ;;  %v579_v11 = vld [vmem:[%s851_s1 + $0x50] sm:$0xff] }
   0x5   :  { %v570_v12 = vld [vmem:[%s851_s1 + $0x8] sm:$0xff]  ;;  %v569_v14 = vld [vmem:[%s851_s1] sm:$0xff]  ;;  %v435_v28 = vld [vmem:[%s853_s0 + $0x10] sm:$0xf] }
   0x6   :  { %243 = vmatpush.bf16.msra.mxu0 %v575_v2  ;;  %586 = vmatpush.bf16.msra.mxu2 %v575_v2  ;;  %v578_v13 = vld [vmem:[%s851_s1 + $0x48] sm:$0xff]  ;;  %v577_v15 = vld [vmem:[%s851_s1 + $0x40] sm:$0xff]  ;;  %v556_v29 = vld [vmem:[%s853_s0 + $0x14] sm:$0xf0] }
   0x7   :  { %292 = vmatpush.bf16.msra.mxu1 %v583_v3  ;;  %594 = vmatpush.bf16.msra.mxu3 %v583_v3  ;;  %v427_v16 = vld [vmem:[%s853_s0] sm:$0xf]  ;;  %v554_v17 = vld [vmem:[%s853_s0 + $0x4] sm:$0xf0]  ;;  %v553_v20 = vld [vmem:[%s853_s0 + $0x4] sm:$0xf]  ;;  %v436_v36 = vor.u32 %v556_v29, %v435_v28 }
   0x8   :  { %v459_v18 = vld [vmem:[%s853_s0 + $0x40] sm:$0xf]  ;;  %v562_v19 = vld [vmem:[%s853_s0 + $0x44] sm:$0xf0]  ;;  %v429_v21 = vld [vmem:[%s853_s0 + $0x8] sm:$0xf0]  ;;  %v428_v24 = vor.u32 %v554_v17, %v427_v16 }
   0x9   :  { %v561_v22 = vld [vmem:[%s853_s0 + $0x44] sm:$0xf]  ;;  %v461_v23 = vld [vmem:[%s853_s0 + $0x48] sm:$0xf0]  ;;  %v460_v25 = vor.u32 %v562_v19, %v459_v18  ;;  %v432_v26 = vor.u32 %v553_v20, %v429_v21  ;;  %v467_v30 = vld [vmem:[%s853_s0 + $0x50] sm:$0xf] }
   0xa   :  { %244 = vmatpush.bf16.msra.mxu0 %v574_v4  ;;  %587 = vmatpush.bf16.msra.mxu2 %v574_v4  ;;  %v464_v27 = vor.u32 %v561_v22, %v461_v23  ;;  %v564_v31 = vld [vmem:[%s853_s0 + $0x54] sm:$0xf0]  ;;  %v555_v32 = vld [vmem:[%s853_s0 + $0x14] sm:$0xf]  ;;  %v437_v33 = vld [vmem:[%s853_s0 + $0x18] sm:$0xf0] }
   0xb   :  { %293 = vmatpush.bf16.msra.mxu1 %v582_v5  ;;  %595 = vmatpush.bf16.msra.mxu3 %v582_v5  ;;  %v563_v34 = vld [vmem:[%s853_s0 + $0x54] sm:$0xf]  ;;  %v469_v35 = vld [vmem:[%s853_s0 + $0x58] sm:$0xf0]  ;;  %v468_v37 = vor.u32 %v564_v31, %v467_v30  ;;  %v440_v38 = vor.u32 %v555_v32, %v437_v33  ;;  %v443_v40 = vld [vmem:[%s853_s0 + $0x20] sm:$0xf] }
   0xc   :  { %v472_v39 = vor.u32 %v563_v34, %v469_v35  ;;  %v558_v41 = vld [vmem:[%s853_s0 + $0x24] sm:$0xf0]  ;;  %v475_v42 = vld [vmem:[%s853_s0 + $0x60] sm:$0xf]  ;;  %v557_v44 = vld [vmem:[%s853_s0 + $0x24] sm:$0xf] }
   0xd   :  { %v566_v43 = vld [vmem:[%s853_s0 + $0x64] sm:$0xf0]  ;;  %v445_v45 = vld [vmem:[%s853_s0 + $0x28] sm:$0xf0]  ;;  %v565_v46 = vld [vmem:[%s853_s0 + $0x64] sm:$0xf]  ;;  %v444_v48 = vor.u32 %v558_v41, %v443_v40 }
   0xe   :  { %245 = vmatpush.bf16.msra.mxu0 %v573_v6  ;;  %588 = vmatpush.bf16.msra.mxu2 %v573_v6  ;;  %v477_v47 = vld [vmem:[%s853_s0 + $0x68] sm:$0xf0]  ;;  %v476_v49 = vor.u32 %v566_v43, %v475_v42  ;;  %v448_v50 = vor.u32 %v557_v44, %v445_v45  ;;  %v451_v52 = vld [vmem:[%s853_s0 + $0x30] sm:$0xf]  ;;  %v560_v53 = vld [vmem:[%s853_s0 + $0x34] sm:$0xf0] }
   0xf   :  { %294 = vmatpush.bf16.msra.mxu1 %v581_v7  ;;  %596 = vmatpush.bf16.msra.mxu3 %v581_v7  ;;  %v480_v51 = vor.u32 %v565_v46, %v477_v47  ;;  %v483_v54 = vld [vmem:[%s853_s0 + $0x70] sm:$0xf]  ;;  %v568_v55 = vld [vmem:[%s853_s0 + $0x74] sm:$0xf0]  ;;  %v559_v56 = vld [vmem:[%s853_s0 + $0x34] sm:$0xf]  ;;  %v452_v60 = vor.u32 %v560_v53, %v451_v52 }
  0x10   :  { %v453_v57 = vld [vmem:[%s853_s0 + $0x38] sm:$0xf0]  ;;  %v567_v58 = vld [vmem:[%s853_s0 + $0x74] sm:$0xf]  ;;  %v484_v61 = vor.u32 %v568_v55, %v483_v54  ;;  %v769_v0 = vld [vmem:[%s852_s2] ss:$0 sm:$0xff] }
  0x11   :  { %v485_v59 = vld [vmem:[%s853_s0 + $0x78] sm:$0xf0]  ;;  %v456_v62 = vor.u32 %v559_v56, %v453_v57 }
  0x12   :  { %246 = vmatpush.bf16.msra.mxu0 %v572_v8  ;;  %589 = vmatpush.bf16.msra.mxu2 %v572_v8  ;;  %v488_v63 = vor.u32 %v567_v58, %v485_v59 }
  0x13   :  { %295 = vmatpush.bf16.msra.mxu1 %v580_v9  ;;  %597 = vmatpush.bf16.msra.mxu3 %v580_v9 }
  0x16   :  { %247 = vmatpush.bf16.msra.mxu0 %v571_v10  ;;  %590 = vmatpush.bf16.msra.mxu2 %v571_v10 }
  0x17   :  { %296 = vmatpush.bf16.msra.mxu1 %v579_v11  ;;  %598 = vmatpush.bf16.msra.mxu3 %v579_v11 }
  0x1a   :  { %248 = vmatpush.bf16.msra.mxu0 %v570_v12  ;;  %591 = vmatpush.bf16.msra.mxu2 %v570_v12 }
  0x1b   :  { %297 = vmatpush.bf16.msra.mxu1 %v578_v13  ;;  %599 = vmatpush.bf16.msra.mxu3 %v578_v13 }
  0x1e   :  { %249 = vmatpush.bf16.msra.mxu0 %v569_v14  ;;  %592 = vmatpush.bf16.msra.mxu2 %v569_v14 }
  0x1f   :  { %298 = vmatpush.bf16.msra.mxu1 %v577_v15  ;;  %600 = vmatpush.bf16.msra.mxu3 %v577_v15 }
  0x21   :  { %250 = vmatmul.bf16.vlgmr.msra.gmra.mxu0 %v428_v24  ;;  %270 = vmatmul.bf16.vlgmr.msra.gmra.mxu2 %v460_v25 }
  0x22   :  { %299 = vmatmul.bf16.vlgmr.msra.gmra.mxu1 %v432_v26  ;;  %319 = vmatmul.bf16.vlgmr.msra.gmra.mxu3 %v464_v27 }
  0x31   :  { %255 = vmatmul.bf16.gmra.mxu0 %v436_v36  ;;  %275 = vmatmul.bf16.gmra.mxu2 %v468_v37 }
  0x32   :  { %304 = vmatmul.bf16.gmra.mxu1 %v440_v38  ;;  %324 = vmatmul.bf16.gmra.mxu3 %v472_v39 }
  0x41   :  { %260 = vmatmul.bf16.gmra.mxu0 %v444_v48  ;;  %280 = vmatmul.bf16.gmra.mxu2 %v476_v49 }
  0x42   :  { %309 = vmatmul.bf16.gmra.mxu1 %v448_v50  ;;  %329 = vmatmul.bf16.gmra.mxu3 %v480_v51 }
  0x51   :  { %265 = vmatmul.bf16.gmra.mxu0 %v452_v60  ;;  %285 = vmatmul.bf16.gmra.mxu2 %v484_v61 }
  0x52   :  { %314 = vmatmul.bf16.gmra.mxu1 %v456_v62  ;;  %334 = vmatmul.bf16.gmra.mxu3 %v488_v63 }
  0x9e   :  { %v251_v1 = vpop.f32.mrf.mxu0 }
  0x9f   :  { %v252_v2 = vadd.f32 %v769_v0, %v251_v1  ;;  %v300_v3 = vpop.f32.mrf.mxu1 }
  0xa1   :  { %v301_v4 = vadd.f32 %v300_v3, %v252_v2 }
  0xa3   :  { %vm340_vm0 = vcmp.ge.f32.partialorder %v301_v4, 0.0  ;;  %v356_v5 = vmul.f32 0.2, %v301_v4 }
  0xa4   :  { %v271_v6 = vpop.f32.mrf.mxu2 }
  0xa5   :  { %v372_v7 = vsel %vm340_vm0, %v301_v4, %v356_v5  ;;  %v272_v8 = vadd.f32 %v769_v0, %v271_v6  ;;  %v320_v9 = vpop.f32.mrf.mxu3 }
  0xa6   :  { %v388_v10 = vpack.c.bf16 %v372_v7, %v372_v7  ;;  %v253_v11 = vpop.f32.mrf.mxu0 }
  0xa7   :  { %v321_v12 = vadd.f32 %v320_v9, %v272_v8  ;;  %v254_v13 = vadd.f32 %v769_v0, %v253_v11  ;;  %v302_v14 = vpop.f32.mrf.mxu1 }
  0xa8   :  { %405 = vst.msk [vmem:[%s854_s3] sm:$0xf] %vm404_vm1, %v388_v10 }
  0xa9   :  { %vm348_vm2 = vcmp.ge.f32.partialorder %v321_v12, 0.0  ;;  %v364_v15 = vmul.f32 0.2, %v321_v12  ;;  %v303_v16 = vadd.f32 %v302_v14, %v254_v13 }
  0xab   :  { %v380_v17 = vsel %vm348_vm2, %v321_v12, %v364_v15  ;;  %vm341_vm3 = vcmp.ge.f32.partialorder %v303_v16, 0.0  ;;  %v357_v18 = vmul.f32 0.2, %v303_v16 }
  0xac   :  { %v396_v19 = vpack.c.bf16 %v380_v17, %v380_v17  ;;  %v273_v20 = vpop.f32.mrf.mxu2 }
  0xad   :  { %v373_v21 = vsel %vm341_vm3, %v303_v16, %v357_v18  ;;  %v274_v22 = vadd.f32 %v769_v0, %v273_v20  ;;  %v322_v23 = vpop.f32.mrf.mxu3 }
  0xae   :  { %413 = vst.msk [vmem:[%s854_s3 + $0x20] sm:$0xf] %vm404_vm1, %v396_v19  ;;  %v389_v24 = vpack.c.bf16 %v373_v21, %v373_v21  ;;  %v256_v25 = vpop.f32.mrf.mxu0 }
  0xaf   :  { %v323_v26 = vadd.f32 %v322_v23, %v274_v22  ;;  %v257_v27 = vadd.f32 %v769_v0, %v256_v25  ;;  %v305_v28 = vpop.f32.mrf.mxu1 }
  0xb0   :  { %406 = vst.msk [vmem:[%s854_s3 + $0x4] sm:$0xf] %vm404_vm1, %v389_v24 }
  0xb1   :  { %vm349_vm4 = vcmp.ge.f32.partialorder %v323_v26, 0.0  ;;  %v365_v29 = vmul.f32 0.2, %v323_v26  ;;  %v306_v30 = vadd.f32 %v305_v28, %v257_v27 }
  0xb3   :  { %v381_v31 = vsel %vm349_vm4, %v323_v26, %v365_v29  ;;  %vm342_vm5 = vcmp.ge.f32.partialorder %v306_v30, 0.0  ;;  %v358_v32 = vmul.f32 0.2, %v306_v30 }
  0xb4   :  { %v397_v33 = vpack.c.bf16 %v381_v31, %v381_v31  ;;  %v276_v34 = vpop.f32.mrf.mxu2 }
  0xb5   :  { %v374_v35 = vsel %vm342_vm5, %v306_v30, %v358_v32  ;;  %v277_v36 = vadd.f32 %v769_v0, %v276_v34  ;;  %v325_v37 = vpop.f32.mrf.mxu3 }
  0xb6   :  { %414 = vst.msk [vmem:[%s854_s3 + $0x24] sm:$0xf] %vm404_vm1, %v397_v33  ;;  %v390_v38 = vpack.c.bf16 %v374_v35, %v374_v35  ;;  %v258_v39 = vpop.f32.mrf.mxu0 }
  0xb7   :  { %v326_v40 = vadd.f32 %v325_v37, %v277_v36  ;;  %v259_v41 = vadd.f32 %v769_v0, %v258_v39  ;;  %v307_v42 = vpop.f32.mrf.mxu1 }
  0xb8   :  { %407 = vst.msk [vmem:[%s854_s3 + $0x8] sm:$0xf] %vm404_vm1, %v390_v38 }
  0xb9   :  { %vm350_vm6 = vcmp.ge.f32.partialorder %v326_v40, 0.0  ;;  %v366_v43 = vmul.f32 0.2, %v326_v40  ;;  %v308_v44 = vadd.f32 %v307_v42, %v259_v41 }
  0xbb   :  { %v382_v45 = vsel %vm350_vm6, %v326_v40, %v366_v43  ;;  %vm343_vm7 = vcmp.ge.f32.partialorder %v308_v44, 0.0  ;;  %v359_v46 = vmul.f32 0.2, %v308_v44 }
  0xbc   :  { %v398_v47 = vpack.c.bf16 %v382_v45, %v382_v45  ;;  %v278_v48 = vpop.f32.mrf.mxu2 }
  0xbd   :  { %v375_v49 = vsel %vm343_vm7, %v308_v44, %v359_v46  ;;  %v279_v50 = vadd.f32 %v769_v0, %v278_v48  ;;  %v327_v51 = vpop.f32.mrf.mxu3 }
  0xbe   :  { %415 = vst.msk [vmem:[%s854_s3 + $0x28] sm:$0xf] %vm404_vm1, %v398_v47  ;;  %v391_v52 = vpack.c.bf16 %v375_v49, %v375_v49  ;;  %v261_v53 = vpop.f32.mrf.mxu0 }
  0xbf   :  { %v328_v54 = vadd.f32 %v327_v51, %v279_v50  ;;  %v262_v55 = vadd.f32 %v769_v0, %v261_v53  ;;  %v310_v56 = vpop.f32.mrf.mxu1 }
  0xc0   :  { %408 = vst.msk [vmem:[%s854_s3 + $0xc] sm:$0xf] %vm404_vm1, %v391_v52 }
  0xc1   :  { %vm351_vm8 = vcmp.ge.f32.partialorder %v328_v54, 0.0  ;;  %v367_v57 = vmul.f32 0.2, %v328_v54  ;;  %v311_v58 = vadd.f32 %v310_v56, %v262_v55 }
  0xc3   :  { %v383_v59 = vsel %vm351_vm8, %v328_v54, %v367_v57  ;;  %vm344_vm9 = vcmp.ge.f32.partialorder %v311_v58, 0.0  ;;  %v360_v60 = vmul.f32 0.2, %v311_v58 }
  0xc4   :  { %v399_v61 = vpack.c.bf16 %v383_v59, %v383_v59  ;;  %v281_v62 = vpop.f32.mrf.mxu2 }
  0xc5   :  { %v376_v63 = vsel %vm344_vm9, %v311_v58, %v360_v60  ;;  %v282_v1 = vadd.f32 %v769_v0, %v281_v62  ;;  %v330_v2 = vpop.f32.mrf.mxu3 }
  0xc6   :  { %416 = vst.msk [vmem:[%s854_s3 + $0x2c] sm:$0xf] %vm404_vm1, %v399_v61  ;;  %v392_v3 = vpack.c.bf16 %v376_v63, %v376_v63  ;;  %v263_v4 = vpop.f32.mrf.mxu0 }
  0xc7   :  { %v331_v5 = vadd.f32 %v330_v2, %v282_v1  ;;  %v264_v6 = vadd.f32 %v769_v0, %v263_v4  ;;  %v312_v7 = vpop.f32.mrf.mxu1 }
  0xc8   :  { %409 = vst.msk [vmem:[%s854_s3 + $0x10] sm:$0xf] %vm404_vm1, %v392_v3 }
  0xc9   :  { %vm352_vm10 = vcmp.ge.f32.partialorder %v331_v5, 0.0  ;;  %v368_v8 = vmul.f32 0.2, %v331_v5  ;;  %v313_v9 = vadd.f32 %v312_v7, %v264_v6 }
  0xcb   :  { %v384_v10 = vsel %vm352_vm10, %v331_v5, %v368_v8  ;;  %vm345_vm11 = vcmp.ge.f32.partialorder %v313_v9, 0.0  ;;  %v361_v11 = vmul.f32 0.2, %v313_v9 }
  0xcc   :  { %v400_v12 = vpack.c.bf16 %v384_v10, %v384_v10  ;;  %v283_v13 = vpop.f32.mrf.mxu2 }
  0xcd   :  { %v377_v14 = vsel %vm345_vm11, %v313_v9, %v361_v11  ;;  %v284_v15 = vadd.f32 %v769_v0, %v283_v13  ;;  %v332_v16 = vpop.f32.mrf.mxu3 }
  0xce   :  { %417 = vst.msk [vmem:[%s854_s3 + $0x30] sm:$0xf] %vm404_vm1, %v400_v12  ;;  %v393_v17 = vpack.c.bf16 %v377_v14, %v377_v14  ;;  %v266_v18 = vpop.f32.mrf.mxu0 }
  0xcf   :  { %v333_v19 = vadd.f32 %v332_v16, %v284_v15  ;;  %v267_v20 = vadd.f32 %v769_v0, %v266_v18  ;;  %v315_v21 = vpop.f32.mrf.mxu1 }
  0xd0   :  { %410 = vst.msk [vmem:[%s854_s3 + $0x14] sm:$0xf] %vm404_vm1, %v393_v17 }
  0xd1   :  { %vm353_vm12 = vcmp.ge.f32.partialorder %v333_v19, 0.0  ;;  %v369_v22 = vmul.f32 0.2, %v333_v19  ;;  %v316_v23 = vadd.f32 %v315_v21, %v267_v20 }
  0xd3   :  { %v385_v24 = vsel %vm353_vm12, %v333_v19, %v369_v22  ;;  %vm346_vm13 = vcmp.ge.f32.partialorder %v316_v23, 0.0  ;;  %v362_v25 = vmul.f32 0.2, %v316_v23 }
  0xd4   :  { %v401_v26 = vpack.c.bf16 %v385_v24, %v385_v24  ;;  %v286_v27 = vpop.f32.mrf.mxu2 }
  0xd5   :  { %v378_v28 = vsel %vm346_vm13, %v316_v23, %v362_v25  ;;  %v287_v29 = vadd.f32 %v769_v0, %v286_v27  ;;  %v335_v30 = vpop.f32.mrf.mxu3 }
  0xd6   :  { %418 = vst.msk [vmem:[%s854_s3 + $0x34] sm:$0xf] %vm404_vm1, %v401_v26  ;;  %v394_v31 = vpack.c.bf16 %v378_v28, %v378_v28  ;;  %v268_v32 = vpop.f32.mrf.mxu0 }
  0xd7   :  { %v336_v33 = vadd.f32 %v335_v30, %v287_v29  ;;  %v269_v34 = vadd.f32 %v769_v0, %v268_v32  ;;  %v317_v35 = vpop.f32.mrf.mxu1 }
  0xd8   :  { %411 = vst.msk [vmem:[%s854_s3 + $0x18] sm:$0xf] %vm404_vm1, %v394_v31 }
  0xd9   :  { %vm354_vm14 = vcmp.ge.f32.partialorder %v336_v33, 0.0  ;;  %v370_v36 = vmul.f32 0.2, %v336_v33  ;;  %v318_v37 = vadd.f32 %v317_v35, %v269_v34 }
  0xdb   :  { %v386_v38 = vsel %vm354_vm14, %v336_v33, %v370_v36  ;;  %vm347_vm15 = vcmp.ge.f32.partialorder %v318_v37, 0.0  ;;  %v363_v39 = vmul.f32 0.2, %v318_v37 }
  0xdc   :  { %v402_v40 = vpack.c.bf16 %v386_v38, %v386_v38  ;;  %v288_v41 = vpop.f32.mrf.mxu2 }
  0xdd   :  { %v379_v42 = vsel %vm347_vm15, %v318_v37, %v363_v39  ;;  %v289_v43 = vadd.f32 %v769_v0, %v288_v41  ;;  %v337_v45 = vpop.f32.mrf.mxu3 }
  0xde   :  { %419 = vst.msk [vmem:[%s854_s3 + $0x38] sm:$0xf] %vm404_vm1, %v402_v40  ;;  %v395_v44 = vpack.c.bf16 %v379_v42, %v379_v42 }
  0xdf   :  { %v338_v46 = vadd.f32 %v337_v45, %v289_v43 }
  0xe0   :  { %412 = vst.msk [vmem:[%s854_s3 + $0x1c] sm:$0xf] %vm404_vm1, %v395_v44 }
  0xe1   :  { %vm355_vm0 = vcmp.ge.f32.partialorder %v338_v46, 0.0  ;;  %v371_v47 = vmul.f32 0.2, %v338_v46 }
  0xe3   :  { %v387_v48 = vsel %vm355_vm0, %v338_v46, %v371_v47 }
  0xe4   :  { %v403_v49 = vpack.c.bf16 %v387_v48, %v387_v48 }
  0xe6   :  { %420 = vst.msk [vmem:[%s854_s3 + $0x3c] sm:$0xf] %vm404_vm1, %v403_v49 }

// kernel: discriminator_forward.7
= control target key start
LH: loop header
LB: loop body
LE: loop exit
PB: predicated region body
PF: predicated region fallthrough
CT: control target
= control target key end

     0   :  { %vm425_vm4 = vcmask 261120   ;;  %vm449_vm5 = vcmask 517120   ;;  %vm472_vm9 = vcmask 1024   ;;  %s879_s1 = inlined_call_operand.vmem [shape: bf16[512,64], index: 1, kind: input, shape index: {}]   ;;  %s880_s2 = inlined_call_operand.vmem [shape: f32[1,64], index: 2, kind: input, shape index: {}]   ;;  %s881_s0 = inlined_call_operand.vmem [shape: bf16[32,512], index: 0, kind: input, shape index: {}]   ;;  %s882_s3 = inlined_call_operand.vmem [shape: f32[32,64], index: 3, kind: input, shape index: {}]   ;;  %s883_s4 = inlined_call_operand.vmem [shape: f32[2,32], index: 4, kind: input, shape index: {}]   ;;  %s884_s5 = inlined_call_operand.vmem [shape: f32[2,1], index: 5, kind: output, shape index: {}]  }
   0x1   :  { %v654_v0 = vld [vmem:[%s879_s1 + $0x38] sm:$0xff]  ;;  %v653_v4 = vld [vmem:[%s879_s1 + $0x30] sm:$0xff]  ;;  %v652_v8 = vld [vmem:[%s879_s1 + $0x28] sm:$0xff] }
   0x2   :  { %v662_v1 = vld [vmem:[%s879_s1 + $0x78] sm:$0xff]  ;;  %328 = vmatpush.bf16.msra.mxu0 %v654_v0  ;;  %v661_v5 = vld [vmem:[%s879_s1 + $0x70] sm:$0xff]  ;;  %v660_v9 = vld [vmem:[%s879_s1 + $0x68] sm:$0xff] }
   0x3   :  { %v670_v2 = vld [vmem:[%s879_s1 + $0xb8] sm:$0xff]  ;;  %347 = vmatpush.bf16.msra.mxu1 %v662_v1  ;;  %v669_v6 = vld [vmem:[%s879_s1 + $0xb0] sm:$0xff]  ;;  %v668_v10 = vld [vmem:[%s879_s1 + $0xa8] sm:$0xff] }
   0x4   :  { %v678_v3 = vld [vmem:[%s879_s1 + $0xf8] sm:$0xff]  ;;  %366 = vmatpush.bf16.msra.mxu2 %v670_v2  ;;  %v677_v7 = vld [vmem:[%s879_s1 + $0xf0] sm:$0xff]  ;;  %v676_v11 = vld [vmem:[%s879_s1 + $0xe8] sm:$0xff] }
   0x5   :  { %385 = vmatpush.bf16.msra.mxu3 %v678_v3  ;;  %v651_v12 = vld [vmem:[%s879_s1 + $0x20] sm:$0xff]  ;;  %v650_v16 = vld [vmem:[%s879_s1 + $0x18] sm:$0xff]  ;;  %v649_v20 = vld [vmem:[%s879_s1 + $0x10] sm:$0xff] }
   0x6   :  { %329 = vmatpush.bf16.msra.mxu0 %v653_v4  ;;  %v659_v13 = vld [vmem:[%s879_s1 + $0x60] sm:$0xff]  ;;  %v658_v17 = vld [vmem:[%s879_s1 + $0x58] sm:$0xff]  ;;  %v657_v21 = vld [vmem:[%s879_s1 + $0x50] sm:$0xff] }
   0x7   :  { %348 = vmatpush.bf16.msra.mxu1 %v661_v5  ;;  %v667_v14 = vld [vmem:[%s879_s1 + $0xa0] sm:$0xff]  ;;  %v666_v18 = vld [vmem:[%s879_s1 + $0x98] sm:$0xff]  ;;  %v665_v22 = vld [vmem:[%s879_s1 + $0x90] sm:$0xff] }
   0x8   :  { %367 = vmatpush.bf16.msra.mxu2 %v669_v6  ;;  %v675_v15 = vld [vmem:[%s879_s1 + $0xe0] sm:$0xff]  ;;  %v674_v19 = vld [vmem:[%s879_s1 + $0xd8] sm:$0xff]  ;;  %v673_v23 = vld [vmem:[%s879_s1 + $0xd0] sm:$0xff] }
   0x9   :  { %386 = vmatpush.bf16.msra.mxu3 %v677_v7  ;;  %v648_v24 = vld [vmem:[%s879_s1 + $0x8] sm:$0xff]  ;;  %v647_v28 = vld [vmem:[%s879_s1] sm:$0xff]  ;;  %v641_v33 = vld [vmem:[%s881_s0 + $0xc] sm:$0xf0] }
   0xa   :  { %330 = vmatpush.bf16.msra.mxu0 %v652_v8  ;;  %v656_v25 = vld [vmem:[%s879_s1 + $0x48] sm:$0xff]  ;;  %v655_v29 = vld [vmem:[%s879_s1 + $0x40] sm:$0xff]  ;;  %v482_v35 = vld [vmem:[%s881_s0 + $0x10] sm:$0xf0] }
   0xb   :  { %349 = vmatpush.bf16.msra.mxu1 %v660_v9  ;;  %v664_v26 = vld [vmem:[%s879_s1 + $0x88] sm:$0xff]  ;;  %v663_v30 = vld [vmem:[%s879_s1 + $0x80] sm:$0xff]  ;;  %v642_v37 = vld [vmem:[%s881_s0 + $0x14] sm:$0xf0] }
   0xc   :  { %368 = vmatpush.bf16.msra.mxu2 %v668_v10  ;;  %v672_v27 = vld [vmem:[%s879_s1 + $0xc8] sm:$0xff]  ;;  %v671_v31 = vld [vmem:[%s879_s1 + $0xc0] sm:$0xff]  ;;  %v490_v39 = vld [vmem:[%s881_s0 + $0x18] sm:$0xf0] }
   0xd   :  { %387 = vmatpush.bf16.msra.mxu3 %v676_v11  ;;  %v480_v32 = vld [vmem:[%s881_s0] sm:$0xf]  ;;  %v639_v34 = vld [vmem:[%s881_s0 + $0x4] sm:$0xf]  ;;  %v488_v36 = vld [vmem:[%s881_s0 + $0x8] sm:$0xf] }
   0xe   :  { %331 = vmatpush.bf16.msra.mxu0 %v651_v12  ;;  %v640_v38 = vld [vmem:[%s881_s0 + $0xc] sm:$0xf]  ;;  %v481_v40 = vor.u32 %v641_v33, %v480_v32  ;;  %v485_v41 = vor.u32 %v639_v34, %v482_v35  ;;  %v489_v42 = vor.u32 %v642_v37, %v488_v36  ;;  %v496_v44 = vld [vmem:[%s881_s0 + $0x20] sm:$0xf]  ;;  %v645_v45 = vld [vmem:[%s881_s0 + $0x2c] sm:$0xf0] }
   0xf   :  { %350 = vmatpush.bf16.msra.mxu1 %v659_v13  ;;  %v493_v43 = vor.u32 %v640_v38, %v490_v39  ;;  %v643_v46 = vld [vmem:[%s881_s0 + $0x24] sm:$0xf]  ;;  %v498_v47 = vld [vmem:[%s881_s0 + $0x30] sm:$0xf0]  ;;  %v504_v48 = vld [vmem:[%s881_s0 + $0x28] sm:$0xf]  ;;  %v497_v52 = vor.u32 %v645_v45, %v496_v44 }
  0x10   :  { %369 = vmatpush.bf16.msra.mxu2 %v667_v14  ;;  %v646_v49 = vld [vmem:[%s881_s0 + $0x34] sm:$0xf0]  ;;  %v644_v50 = vld [vmem:[%s881_s0 + $0x2c] sm:$0xf]  ;;  %v506_v51 = vld [vmem:[%s881_s0 + $0x38] sm:$0xf0]  ;;  %v501_v53 = vor.u32 %v643_v46, %v498_v47 }
  0x11   :  { %388 = vmatpush.bf16.msra.mxu3 %v675_v15  ;;  %v505_v54 = vor.u32 %v646_v49, %v504_v48  ;;  %v509_v55 = vor.u32 %v644_v50, %v506_v51  ;;  %v679_v0 = vld [vmem:[%s880_s2] ss:$0 sm:$0xff]  ;;  %v418_v32 = vld [vmem:[%s882_s3 + $0x10] sm:$0xff]  ;;  %v417_v35 = vld [vmem:[%s882_s3 + $0x8] sm:$0xff] }
  0x12   :  { %332 = vmatpush.bf16.msra.mxu0 %v650_v16  ;;  %v416_v38 = vld [vmem:[%s882_s3] sm:$0xff] }
  0x13   :  { %351 = vmatpush.bf16.msra.mxu1 %v658_v17 }
  0x14   :  { %370 = vmatpush.bf16.msra.mxu2 %v666_v18 }
  0x15   :  { %389 = vmatpush.bf16.msra.mxu3 %v674_v19 }
  0x16   :  { %333 = vmatpush.bf16.msra.mxu0 %v649_v20 }
  0x17   :  { %352 = vmatpush.bf16.msra.mxu1 %v657_v21 }
  0x18   :  { %371 = vmatpush.bf16.msra.mxu2 %v665_v22 }
  0x19   :  { %390 = vmatpush.bf16.msra.mxu3 %v673_v23 }
  0x1a   :  { %334 = vmatpush.bf16.msra.mxu0 %v648_v24 }
  0x1b   :  { %353 = vmatpush.bf16.msra.mxu1 %v656_v25 }
  0x1c   :  { %372 = vmatpush.bf16.msra.mxu2 %v664_v26 }
  0x1d   :  { %391 = vmatpush.bf16.msra.mxu3 %v672_v27 }
  0x1e   :  { %335 = vmatpush.bf16.msra.mxu0 %v647_v28  ;;  %v419_v28 = vld [vmem:[%s882_s3 + $0x18] sm:$0xff] }
  0x1f   :  { %354 = vmatpush.bf16.msra.mxu1 %v655_v29 }
  0x20   :  { %373 = vmatpush.bf16.msra.mxu2 %v663_v30 }
  0x21   :  { %392 = vmatpush.bf16.msra.mxu3 %v671_v31  ;;  %336 = vmatmul.bf16.vlgmr.msra.gmra.mxu0 %v481_v40 }
  0x22   :  { %355 = vmatmul.bf16.vlgmr.msra.gmra.mxu1 %v485_v41  ;;  %v424_v41 = vld [vmem:[%s883_s4] sm:$0x3] }
  0x23   :  { %374 = vmatmul.bf16.vlgmr.msra.gmra.mxu2 %v489_v42 }
  0x24   :  { %393 = vmatmul.bf16.vlgmr.msra.gmra.mxu3 %v493_v43 }
  0x31   :  { %341 = vmatmul.bf16.gmra.mxu0 %v497_v52 }
  0x32   :  { %360 = vmatmul.bf16.gmra.mxu1 %v501_v53 }
  0x33   :  { %379 = vmatmul.bf16.gmra.mxu2 %v505_v54 }
  0x34   :  { %398 = vmatmul.bf16.gmra.mxu3 %v509_v55 }
  0x9e   :  { %v337_v56 = vpop.f32.mrf.mxu0 }
  0x9f   :  { %v356_v57 = vpop.f32.mrf.mxu1  ;;  %v338_v4 = vadd.f32 %v679_v0, %v337_v56 }
  0xa1   :  { %v357_v10 = vadd.f32 %v356_v57, %v338_v4 }
  0xa6   :  { %v375_v58 = vpop.f32.mrf.mxu2  ;;  %v339_v60 = vpop.f32.mrf.mxu0 }
  0xa7   :  { %v394_v59 = vpop.f32.mrf.mxu3  ;;  %v358_v61 = vpop.f32.mrf.mxu1  ;;  %v340_v5 = vadd.f32 %v679_v0, %v339_v60  ;;  %v376_v16 = vadd.f32 %v375_v58, %v357_v10 }
  0xa9   :  { %v359_v11 = vadd.f32 %v358_v61, %v340_v5  ;;  %v395_v23 = vadd.f32 %v394_v59, %v376_v16 }
  0xab   :  { %v408_v29 = vmul.f32 0.2, %v395_v23  ;;  %vm404_vm3 = vcmp.ge.f32.partialorder %v395_v23, 0.0 }
  0xad   :  { %v412_v37 = vsel %vm404_vm3, %v395_v23, %v408_v29 }
  0xae   :  { %v377_v62 = vpop.f32.mrf.mxu2  ;;  %v342_v1 = vpop.f32.mrf.mxu0  ;;  %v420_v40 = vmul.f32 %v416_v38, %v412_v37 }
  0xaf   :  { %v396_v63 = vpop.f32.mrf.mxu3  ;;  %v343_v2 = vadd.f32 %v679_v0, %v342_v1  ;;  %v361_v3 = vpop.f32.mrf.mxu1  ;;  %v378_v14 = vadd.f32 %v377_v62, %v359_v11 }
  0xb1   :  { %v362_v6 = vadd.f32 %v361_v3, %v343_v2  ;;  %v397_v20 = vadd.f32 %v396_v63, %v378_v14 }
  0xb3   :  { %v409_v26 = vmul.f32 0.2, %v397_v20  ;;  %vm405_vm2 = vcmp.ge.f32.partialorder %v397_v20, 0.0 }
  0xb5   :  { %v413_v34 = vsel %vm405_vm2, %v397_v20, %v409_v26 }
  0xb6   :  { %v380_v7 = vpop.f32.mrf.mxu2  ;;  %v344_v9 = vpop.f32.mrf.mxu0  ;;  %v421_v39 = vmul.f32 %v417_v35, %v413_v34 }
  0xb7   :  { %v399_v8 = vpop.f32.mrf.mxu3  ;;  %v381_v12 = vadd.f32 %v380_v7, %v362_v6  ;;  %v345_v13 = vadd.f32 %v679_v0, %v344_v9  ;;  %v363_v15 = vpop.f32.mrf.mxu1 }
  0xb9   :  { %v400_v17 = vadd.f32 %v399_v8, %v381_v12  ;;  %v364_v18 = vadd.f32 %v363_v15, %v345_v13 }
  0xbb   :  { %v410_v24 = vmul.f32 0.2, %v400_v17  ;;  %vm406_vm0 = vcmp.ge.f32.partialorder %v400_v17, 0.0 }
  0xbd   :  { %v414_v31 = vsel %vm406_vm0, %v400_v17, %v410_v24 }
  0xbe   :  { %v382_v19 = vpop.f32.mrf.mxu2  ;;  %v422_v36 = vmul.f32 %v418_v32, %v414_v31 }
  0xbf   :  { %v383_v21 = vadd.f32 %v382_v19, %v364_v18  ;;  %v401_v22 = vpop.f32.mrf.mxu3 }
  0xc1   :  { %v402_v25 = vadd.f32 %v401_v22, %v383_v21 }
  0xc3   :  { %v411_v27 = vmul.f32 0.2, %v402_v25  ;;  %vm407_vm1 = vcmp.ge.f32.partialorder %v402_v25, 0.0 }
  0xc5   :  { %v415_v30 = vsel %vm407_vm1, %v402_v25, %v411_v27 }
  0xc6   :  { %v423_v33 = vmul.f32 %v419_v28, %v415_v30 }
  0xc8   :  { %441 = vmatpush.msrb.mxu0 %v423_v33 }
  0xca   :  { %442 = vmatpush.msrb.mxu0 %v422_v36 }
  0xcc   :  { %443 = vmatpush.msrb.mxu0 %v421_v39 }
  0xce   :  { %444 = vmatpush.msrb.mxu0 %v420_v40 }
  0xcf   :  { %638 = vmatmul.msk.f32.vlgmr.msrb.gmra.mxu0 %vm425_vm4, %v424_v41 }
 0x14c   :  { %v446_v42 = vpop.f32.mrf.mxu0 }
 0x14d   :  { %v450_v43 = vsel %vm449_vm5, %v446_v42, 0.0 }
 0x14e   :  { %451 = vadd.xlane.f32.xlu0 %v450_v43 }
 0x1c1   :  { %v452_v44 = vpop.xlane.xlu0 %451 }
 0x1c2   :  { %v453_v45 = vsub.f32 0.0, %v452_v44 }
 0x1c4   :  { %v454_v46 = vmul.f32 1.442695, %v453_v45 }
 0x1c6   :  { %680 = vpow2.f32 %v454_v46 }
 0x1cc   :  { %v681_v47 = vpop.eup %680 }
 0x1cd   :  { %v456_v48 = vadd.f32 1.0, %v681_v47 }
 0x1cf   :  { %682 = vrcp.f32 %v456_v48  ;;  %v468_v52 = vand.u32 2147483648, %v456_v48  ;;  %v466_v54 = vand.u32 2147483647, %v456_v48  ;;  %vm462_vm7 = vweird.f32 %v456_v48 }
 0x1d1   :  { %v469_v56 = vor.u32 1.1754944e-38, %v468_v52  ;;  %vm467_vm10 = vcmp.eq.f32.partialorder %v466_v54, 8.507059e+37 }
 0x1d5   :  { %v683_v49 = vpop.eup %682 }
 0x1d6   :  { %v458_v50 = vmul.f32 %v683_v49, %v456_v48  ;;  %vm463_vm6 = vweird.f32 %v683_v49 }
 0x1d7   :  { %vm464_vm8 = vmor %vm462_vm7, %vm463_vm6 }
 0x1d8   :  { %v459_v51 = vsub.f32 1.0, %v458_v50 }
 0x1da   :  { %v460_v53 = vmul.f32 %v683_v49, %v459_v51 }
 0x1dc   :  { %v461_v55 = vadd.f32 %v683_v49, %v460_v53 }
 0x1de   :  { %v465_v57 = vsel %vm464_vm8, %v683_v49, %v461_v55 }
 0x1df   :  { %v470_v58 = vsel %vm467_vm10, %v469_v56, %v465_v57 }
 0x1e0   :  { %473 = vst.msk [vmem:[%s884_s5] sm:$0x3] %vm472_vm9, %v470_v58 }

</bundles_post_ra>
